<compile_context>
chip_gen: v7x
topology: tpu7x:2x2x1
jax: 0.10.0
libtpu: 0.0.40
codegen_flags: <defaults>
</compile_context>

<pallas_src>
import jax
import jax.numpy as jnp
from jax.experimental import pallas as pl
from jax.experimental.pallas import tpu as pltpu

_SLOPE = 0.2  # matches nn.LeakyReLU(negative_slope=0.2) in the module


def _lrelu_f32(x):
    # LeakyReLU(0.2) as a 2-op max (valid because 0 < slope < 1).
    return jnp.maximum(x, _SLOPE * x)


def critic_kernel(state_ref, action_ref,
                  w1_ref, b1_ref,
                  w2s_ref, w2a_ref, b2_ref,
                  w3_ref, b3_ref,
                  w4_ref, b4_ref,
                  out_ref):
    state_bf = state_ref[...].astype(jnp.bfloat16)    # (TILE_B, n_state)
    action_bf = action_ref[...].astype(jnp.bfloat16)  # (TILE_B, n_action)

    # ---- fcs1 + LeakyReLU: bf16 MXU matmul, f32 accumulate ----------------
    h1 = jnp.dot(state_bf, w1_ref[...],
                 preferred_element_type=jnp.float32) + b1_ref[...]
    xs = _lrelu_f32(h1)

    # ---- fc2 on cat(xs, action): two MXU dots, shared f32 accumulation ----
    # cat(xs, action) @ W2 == xs @ W2[:fcs1] + action @ W2[fcs1:]
    acc2 = (jnp.dot(xs.astype(jnp.bfloat16), w2s_ref[...],
                    preferred_element_type=jnp.float32)
            + jnp.dot(action_bf, w2a_ref[...],
                      preferred_element_type=jnp.float32)
            + b2_ref[...])
    h2 = _lrelu_f32(acc2)

    # ---- fc3 + LeakyReLU ----------------------------------------------------
    acc3 = jnp.dot(h2.astype(jnp.bfloat16), w3_ref[...],
                   preferred_element_type=jnp.float32) + b3_ref[...]
    h3 = _lrelu_f32(acc3)

    # ---- fc4 (out_features=1): VPU multiply + lane reduction ----------------
    # w4 stored as a (1, fc3) f32 row; b4 is a (1,1) scalar in SMEM.
    # TODO(synk): if the XLU relayout of this reduction ever binds, switch to a
    # zero-padded (fc3, 128) MXU dot and take lane 0.
    q = jnp.sum(h3 * w4_ref[...], axis=-1) + b4_ref[0, 0]   # (TILE_B,)
    out_ref[0, :] = q                                        # lane-dense store


def _pick_tile_b(batch, tile_b):
    """Clamp the batch tile: multiple of 128, no bigger than round_up(B,128),
    and (when possible) small enough that the grid has >=2 steps (v7x: 2 TCs)."""
    b128 = pl.cdiv(batch, 128) * 128
    tile = min(tile_b, b128)
    if b128 >= 256:
        tile = min(tile, max(128, (b128 // 2) // 128 * 128))
    return max(128, (tile // 128) * 128)


def critic_forward(state, action, params, tile_b=512):
    """state: [B, n_state] f32, action: [B, n_action] f32 -> [B, 1] f32."""
    B, n_state = state.shape
    n_action = action.shape[1]

    assert tile_b % 128 == 0, "tile_b must be a multiple of 128"
    tile = _pick_tile_b(B, tile_b)

    # Pad batch up to a multiple of the tile only when required.
    b_pad = pl.cdiv(B, tile) * tile
    if b_pad != B:
        state = jnp.pad(state, ((0, b_pad - B), (0, 0)))
        action = jnp.pad(action, ((0, b_pad - B), (0, 0)))

    w1, b1 = params["w1"], params["b1"]
    w2s, w2a, b2 = params["w2s"], params["w2a"], params["b2"]
    w3, b3 = params["w3"], params["b3"]
    w4, b4 = params["w4"], params["b4"]

    fcs1_units = w1.shape[1]
    fc2_units = w2s.shape[1]
    fc3_units = w3.shape[1]

    args = (state, action, w1, b1, w2s, w2a, b2, w3, b3, w4, b4)

    def resident(shape):
        # Parameter block: whole array, same block every grid step (stays in VMEM).
        return pl.BlockSpec(shape, lambda i: (0, 0))

    in_specs = [
        pl.BlockSpec((tile, n_state), lambda i: (i, 0)),    # state tile
        pl.BlockSpec((tile, n_action), lambda i: (i, 0)),   # action tile
        resident(w1.shape), resident(b1.shape),
        resident(w2s.shape), resident(w2a.shape), resident(b2.shape),
        resident(w3.shape), resident(b3.shape),
        resident(w4.shape),
        pl.BlockSpec(memory_space=pltpu.MemorySpace.SMEM),  # b4 scalar
    ]
    # Lane-dense output: one (1, TILE_B) row per batch tile.
    out_specs = pl.BlockSpec((1, tile), lambda i: (0, i))

    flops = 2 * b_pad * (n_state * fcs1_units
                         + fcs1_units * fc2_units
                         + n_action * fc2_units
                         + fc2_units * fc3_units
                         + fc3_units)
    bytes_accessed = int(sum(int(a.size) * a.dtype.itemsize for a in args)) + 4 * b_pad

    out = pl.pallas_call(
        critic_kernel,
        out_shape=jax.ShapeDtypeStruct((1, b_pad), jnp.float32),
        grid=(b_pad // tile,),
        in_specs=in_specs,
        out_specs=out_specs,
        compiler_params=pltpu.CompilerParams(
            dimension_semantics=("parallel",)),
        cost_estimate=pl.CostEstimate(
            flops=flops, transcendentals=0, bytes_accessed=bytes_accessed),
    )(*args)

    return out[0, :B].reshape(B, 1)


def init_params(key, n_state, n_action,
                fcs1_units=256, fc2_units=512, fc3_units=256):
    """nn.Linear-style init U(-1/sqrt(fan_in), 1/sqrt(fan_in)).

    MXU weights stored bf16 as [in, out]; VPU-side params (biases, w4) stay f32.
    """
    def linear(k, fan_in, fan_out):
        kw, kb = jax.random.split(k)
        bound = 1.0 / (fan_in ** 0.5)
        w = jax.random.uniform(kw, (fan_in, fan_out), jnp.float32, -bound, bound)
        b = jax.random.uniform(kb, (1, fan_out), jnp.float32, -bound, bound)
        return w, b

    k1, k2, k3, k4 = jax.random.split(key, 4)
    w1, b1 = linear(k1, n_state, fcs1_units)
    w2, b2 = linear(k2, fcs1_units + n_action, fc2_units)
    w3, b3 = linear(k3, fc2_units, fc3_units)
    w4, b4 = linear(k4, fc3_units, 1)
    return {
        "w1": w1.astype(jnp.bfloat16), "b1": b1,
        # split fc2: rows [0:fcs1) multiply xs, rows [fcs1:) multiply action;
        # both are MXU dots in bf16 -- equals cat(xs, action) @ W2 exactly.
        "w2s": w2[:fcs1_units].astype(jnp.bfloat16),
        "w2a": w2[fcs1_units:].astype(jnp.bfloat16),
        "b2": b2,
        "w3": w3.astype(jnp.bfloat16), "b3": b3,
        "w4": w4.T,            # (1, fc3) f32 row for the VPU reduce
        "b4": b4,              # (1, 1) f32 scalar (SMEM)
    }


def critic_reference(state, action, p):
    """Pure-JAX f32 reference using the same (bf16-rounded) stored weights."""
    lrelu = lambda x: jnp.where(x > 0, x, _SLOPE * x)
    xs = lrelu(state @ p["w1"].astype(jnp.float32) + p["b1"])
    h2 = lrelu(xs @ p["w2s"].astype(jnp.float32)
               + action @ p["w2a"].astype(jnp.float32) + p["b2"])
    h3 = lrelu(h2 @ p["w3"].astype(jnp.float32) + p["b3"])
    return jnp.sum(h3 * p["w4"], axis=-1, keepdims=True) + p["b4"][0, 0]


if __name__ == "__main__":
    n_state, n_action = 16, 8
    key = jax.random.PRNGKey(0)
    kp, ks, ka = jax.random.split(key, 3)
    params = init_params(kp, n_state, n_action)

    # Small batch (single grid step; batch padded up to one 128-row tile).
    B1 = 8
    s1 = jax.random.normal(ks, (B1, n_state), jnp.float32)
    a1 = jax.random.normal(ka, (B1, n_action), jnp.float32)
    out1 = jax.block_until_ready(critic_forward(s1, a1, params))
    ref1 = critic_reference(s1, a1, params)
    assert out1.shape == (B1, 1)
    assert jnp.allclose(out1, ref1, atol=5e-2, rtol=5e-2), "mismatch (B=8)"

    # Ragged batch exercising grid > 1 (two 128-row tiles) and the padding path.
    B2 = 200
    ks2, ka2 = jax.random.split(jax.random.PRNGKey(1))
    s2 = jax.random.normal(ks2, (B2, n_state), jnp.float32)
    a2 = jax.random.normal(ka2, (B2, n_action), jnp.float32)
    out2 = jax.block_until_ready(critic_forward(s2, a2, params))
    ref2 = critic_reference(s2, a2, params)
    assert out2.shape == (B2, 1)
    assert jnp.allclose(out2, ref2, atol=5e-2, rtol=5e-2), "mismatch (B=200)"

    print("KERNEL_OK")
</pallas_src>

<mosaic_0001>
module attributes {stable_mosaic.version = 11 : i64} {
  func.func @critic_kernel(%arg0: i32, %arg1: memref<128x16xf32, #tpu.memory_space<vmem>>, %arg2: memref<128x8xf32, #tpu.memory_space<vmem>>, %arg3: memref<16x256xbf16, #tpu.memory_space<vmem>>, %arg4: memref<1x256xf32, #tpu.memory_space<vmem>>, %arg5: memref<256x512xbf16, #tpu.memory_space<vmem>>, %arg6: memref<8x512xbf16, #tpu.memory_space<vmem>>, %arg7: memref<1x512xf32, #tpu.memory_space<vmem>>, %arg8: memref<512x256xbf16, #tpu.memory_space<vmem>>, %arg9: memref<1x256xf32, #tpu.memory_space<vmem>>, %arg10: memref<1x256xf32, #tpu.memory_space<vmem>>, %arg11: memref<1x1xf32, #tpu.memory_space<smem>>, %arg12: memref<1x128xf32, #tpu.memory_space<vmem>>) attributes {dimension_semantics = [#tpu.dimension_semantics<parallel>], iteration_bounds = array<i64: 1>, scalar_prefetch = 0 : i64, scratch_operands = 0 : i64, tpu.core_type = #tpu.core_type<tc>, window_params = [{transform_indices = @transform_0, window_bounds = array<i64: 128, 16>}, {transform_indices = @transform_1, window_bounds = array<i64: 128, 8>}, {pipeline_mode = #tpu.pipeline_mode<synchronous>, transform_indices = @transform_2, window_bounds = array<i64: 16, 256>}, {pipeline_mode = #tpu.pipeline_mode<synchronous>, transform_indices = @transform_3, window_bounds = array<i64: 1, 256>}, {pipeline_mode = #tpu.pipeline_mode<synchronous>, transform_indices = @transform_4, window_bounds = array<i64: 256, 512>}, {pipeline_mode = #tpu.pipeline_mode<synchronous>, transform_indices = @transform_5, window_bounds = array<i64: 8, 512>}, {pipeline_mode = #tpu.pipeline_mode<synchronous>, transform_indices = @transform_6, window_bounds = array<i64: 1, 512>}, {pipeline_mode = #tpu.pipeline_mode<synchronous>, transform_indices = @transform_7, window_bounds = array<i64: 512, 256>}, {pipeline_mode = #tpu.pipeline_mode<synchronous>, transform_indices = @transform_8, window_bounds = array<i64: 1, 256>}, {pipeline_mode = #tpu.pipeline_mode<synchronous>, transform_indices = @transform_9, window_bounds = array<i64: 1, 256>}, {transform_indices = @transform_10, window_bounds = array<i64: 1, 1>}, {transform_indices = @transform_11, window_bounds = array<i64: 1, 128>}]} {
    %c0 = arith.constant 0 : index
    %c0_0 = arith.constant 0 : index
    %0 = vector.load %arg1[%c0, %c0_0] : memref<128x16xf32, #tpu.memory_space<vmem>>, vector<128x16xf32>
    %1 = arith.truncf %0 : vector<128x16xf32> to vector<128x16xbf16>
    %c0_1 = arith.constant 0 : index
    %c0_2 = arith.constant 0 : index
    %2 = vector.load %arg2[%c0_1, %c0_2] : memref<128x8xf32, #tpu.memory_space<vmem>>, vector<128x8xf32>
    %3 = arith.truncf %2 : vector<128x8xf32> to vector<128x8xbf16>
    %c0_3 = arith.constant 0 : index
    %c0_4 = arith.constant 0 : index
    %4 = vector.load %arg3[%c0_3, %c0_4] : memref<16x256xbf16, #tpu.memory_space<vmem>>, vector<16x256xbf16>
    %cst = arith.constant dense<0.000000e+00> : vector<128x256xf32>
    %5 = tpu.matmul %1, %4, %cst {dimension_numbers = #tpu.dot_dimension_numbers<[1], [0], [0], [1], [0, 0, 1, 1], [], []>} : vector<128x16xbf16>, vector<16x256xbf16>, vector<128x256xf32> -> vector<128x256xf32>
    %c0_5 = arith.constant 0 : index
    %c0_6 = arith.constant 0 : index
    %6 = vector.load %arg4[%c0_5, %c0_6] : memref<1x256xf32, #tpu.memory_space<vmem>>, vector<1x256xf32>
    %7 = vector.broadcast %6 : vector<1x256xf32> to vector<128x256xf32>
    %8 = arith.addf %5, %7 : vector<128x256xf32>
    %cst_7 = arith.constant 2.000000e-01 : f32
    %9 = vector.broadcast %cst_7 : f32 to vector<128x256xf32>
    %10 = arith.mulf %9, %8 : vector<128x256xf32>
    %11 = arith.maximumf %8, %10 : vector<128x256xf32>
    %12 = arith.truncf %11 : vector<128x256xf32> to vector<128x256xbf16>
    %c0_8 = arith.constant 0 : index
    %c0_9 = arith.constant 0 : index
    %13 = vector.load %arg5[%c0_8, %c0_9] : memref<256x512xbf16, #tpu.memory_space<vmem>>, vector<256x512xbf16>
    %cst_10 = arith.constant dense<0.000000e+00> : vector<128x512xf32>
    %14 = tpu.matmul %12, %13, %cst_10 {dimension_numbers = #tpu.dot_dimension_numbers<[1], [0], [0], [1], [0, 0, 1, 1], [], []>} : vector<128x256xbf16>, vector<256x512xbf16>, vector<128x512xf32> -> vector<128x512xf32>
    %c0_11 = arith.constant 0 : index
    %c0_12 = arith.constant 0 : index
    %15 = vector.load %arg6[%c0_11, %c0_12] : memref<8x512xbf16, #tpu.memory_space<vmem>>, vector<8x512xbf16>
    %cst_13 = arith.constant dense<0.000000e+00> : vector<128x512xf32>
    %16 = tpu.matmul %3, %15, %cst_13 {dimension_numbers = #tpu.dot_dimension_numbers<[1], [0], [0], [1], [0, 0, 1, 1], [], []>} : vector<128x8xbf16>, vector<8x512xbf16>, vector<128x512xf32> -> vector<128x512xf32>
    %17 = arith.addf %14, %16 : vector<128x512xf32>
    %c0_14 = arith.constant 0 : index
    %c0_15 = arith.constant 0 : index
    %18 = vector.load %arg7[%c0_14, %c0_15] : memref<1x512xf32, #tpu.memory_space<vmem>>, vector<1x512xf32>
    %19 = vector.broadcast %18 : vector<1x512xf32> to vector<128x512xf32>
    %20 = arith.addf %17, %19 : vector<128x512xf32>
    %cst_16 = arith.constant 2.000000e-01 : f32
    %21 = vector.broadcast %cst_16 : f32 to vector<128x512xf32>
    %22 = arith.mulf %21, %20 : vector<128x512xf32>
    %23 = arith.maximumf %20, %22 : vector<128x512xf32>
    %24 = arith.truncf %23 : vector<128x512xf32> to vector<128x512xbf16>
    %c0_17 = arith.constant 0 : index
    %c0_18 = arith.constant 0 : index
    %25 = vector.load %arg8[%c0_17, %c0_18] : memref<512x256xbf16, #tpu.memory_space<vmem>>, vector<512x256xbf16>
    %cst_19 = arith.constant dense<0.000000e+00> : vector<128x256xf32>
    %26 = tpu.matmul %24, %25, %cst_19 {dimension_numbers = #tpu.dot_dimension_numbers<[1], [0], [0], [1], [0, 0, 1, 1], [], []>} : vector<128x512xbf16>, vector<512x256xbf16>, vector<128x256xf32> -> vector<128x256xf32>
    %c0_20 = arith.constant 0 : index
    %c0_21 = arith.constant 0 : index
    %27 = vector.load %arg9[%c0_20, %c0_21] : memref<1x256xf32, #tpu.memory_space<vmem>>, vector<1x256xf32>
    %28 = vector.broadcast %27 : vector<1x256xf32> to vector<128x256xf32>
    %29 = arith.addf %26, %28 : vector<128x256xf32>
    %cst_22 = arith.constant 2.000000e-01 : f32
    %30 = vector.broadcast %cst_22 : f32 to vector<128x256xf32>
    %31 = arith.mulf %30, %29 : vector<128x256xf32>
    %32 = arith.maximumf %29, %31 : vector<128x256xf32>
    %c0_23 = arith.constant 0 : index
    %c0_24 = arith.constant 0 : index
    %33 = vector.load %arg10[%c0_23, %c0_24] : memref<1x256xf32, #tpu.memory_space<vmem>>, vector<1x256xf32>
    %34 = vector.broadcast %33 : vector<1x256xf32> to vector<128x256xf32>
    %35 = arith.mulf %32, %34 : vector<128x256xf32>
    %cst_25 = arith.constant dense<0.000000e+00> : vector<128xf32>
    %36 = vector.multi_reduction <add>, %35, %cst_25 [1] : vector<128x256xf32> to vector<128xf32>
    %c0_26 = arith.constant 0 : index
    %c0_27 = arith.constant 0 : index
    %37 = memref.load %arg11[%c0_26, %c0_27] : memref<1x1xf32, #tpu.memory_space<smem>>
    %38 = vector.broadcast %37 : f32 to vector<128xf32>
    %39 = arith.addf %36, %38 : vector<128xf32>
    %c0_28 = arith.constant 0 : index
    %c0_29 = arith.constant 0 : index
    %40 = vector.load %arg12[%c0_28, %c0_29] : memref<1x128xf32, #tpu.memory_space<vmem>>, vector<1x128xf32>
    %41 = vector.shape_cast %40 : vector<1x128xf32> to vector<128xf32>
    %42 = vector.shape_cast %39 : vector<128xf32> to vector<1x128xf32>
    tpu.vector_store %arg12[%c0_28, %c0_29], %42 {strides = array<i32>} : memref<1x128xf32, #tpu.memory_space<vmem>>, vector<1x128xf32>,
    return
  }
  func.func @transform_0(%arg0: i32) -> (i32, i32) {
    %c0_i32 = arith.constant 0 : i32
    %c0_i32_0 = arith.constant 0 : i32
    return %arg0, %c0_i32 : i32, i32
  }
  func.func @transform_1(%arg0: i32) -> (i32, i32) {
    %c0_i32 = arith.constant 0 : i32
    %c0_i32_0 = arith.constant 0 : i32
    return %arg0, %c0_i32 : i32, i32
  }
  func.func @transform_2(%arg0: i32) -> (i32, i32) {
    %c0_i32 = arith.constant 0 : i32
    %c0_i32_0 = arith.constant 0 : i32
    %c0_i32_1 = arith.constant 0 : i32
    return %c0_i32, %c0_i32_0 : i32, i32
  }
  func.func @transform_3(%arg0: i32) -> (i32, i32) {
    %c0_i32 = arith.constant 0 : i32
    %c0_i32_0 = arith.constant 0 : i32
    %c0_i32_1 = arith.constant 0 : i32
    return %c0_i32, %c0_i32_0 : i32, i32
  }
  func.func @transform_4(%arg0: i32) -> (i32, i32) {
    %c0_i32 = arith.constant 0 : i32
    %c0_i32_0 = arith.constant 0 : i32
    %c0_i32_1 = arith.constant 0 : i32
    return %c0_i32, %c0_i32_0 : i32, i32
  }
  func.func @transform_5(%arg0: i32) -> (i32, i32) {
    %c0_i32 = arith.constant 0 : i32
    %c0_i32_0 = arith.constant 0 : i32
    %c0_i32_1 = arith.constant 0 : i32
    return %c0_i32, %c0_i32_0 : i32, i32
  }
  func.func @transform_6(%arg0: i32) -> (i32, i32) {
    %c0_i32 = arith.constant 0 : i32
    %c0_i32_0 = arith.constant 0 : i32
    %c0_i32_1 = arith.constant 0 : i32
    return %c0_i32, %c0_i32_0 : i32, i32
  }
  func.func @transform_7(%arg0: i32) -> (i32, i32) {
    %c0_i32 = arith.constant 0 : i32
    %c0_i32_0 = arith.constant 0 : i32
    %c0_i32_1 = arith.constant 0 : i32
    return %c0_i32, %c0_i32_0 : i32, i32
  }
  func.func @transform_8(%arg0: i32) -> (i32, i32) {
    %c0_i32 = arith.constant 0 : i32
    %c0_i32_0 = arith.constant 0 : i32
    %c0_i32_1 = arith.constant 0 : i32
    return %c0_i32, %c0_i32_0 : i32, i32
  }
  func.func @transform_9(%arg0: i32) -> (i32, i32) {
    %c0_i32 = arith.constant 0 : i32
    %c0_i32_0 = arith.constant 0 : i32
    %c0_i32_1 = arith.constant 0 : i32
    return %c0_i32, %c0_i32_0 : i32, i32
  }
  func.func @transform_10(%arg0: i32) -> (i32, i32) {
    %c0_i32 = arith.constant 0 : i32
    %c0_i32_0 = arith.constant 0 : i32
    %c0_i32_1 = arith.constant 0 : i32
    return %c0_i32, %c0_i32_0 : i32, i32
  }
  func.func @transform_11(%arg0: i32) -> (i32, i32) {
    %c0_i32 = arith.constant 0 : i32
    %c0_i32_0 = arith.constant 0 : i32
    return %c0_i32, %arg0 : i32, i32
  }
}

</mosaic_0001>

<bundles_post_ra>
// kernel: tpu_custom_call.1
= control target key start
LH: loop header
LB: loop body
LE: loop exit
PB: predicated region body
PF: predicated region fallthrough
CT: control target
= control target key end

     0   :  { %17 = vsyncpa [#allocation4], 0  ;;  %s3730_s0 = inlined_call_operand.vmem [shape: f32[128,16], index: 0, kind: input, shape index: {}]   ;;  %s3731_s1 = inlined_call_operand.vmem [shape: f32[128,8], index: 1, kind: input, shape index: {}]   ;;  %s3732_s2 = inlined_call_operand.vmem [shape: bf16[16,256], index: 2, kind: input, shape index: {}]   ;;  %s3733_s3 = inlined_call_operand.vmem [shape: f32[1,256], index: 3, kind: input, shape index: {}]   ;;  %s3734_s4 = inlined_call_operand.hbm [shape: bf16[256,512], index: 4, kind: input, shape index: {}]   ;;  %s3735_s5 = inlined_call_operand.vmem [shape: bf16[8,512], index: 5, kind: input, shape index: {}]   ;;  %s3736_s6 = inlined_call_operand.vmem [shape: f32[1,512], index: 6, kind: input, shape index: {}]   ;;  %s3737_s7 = inlined_call_operand.hbm [shape: bf16[512,256], index: 7, kind: input, shape index: {}]   ;;  %s3738_s8 = inlined_call_operand.vmem [shape: f32[1,256], index: 8, kind: input, shape index: {}]   ;;  %s3739_s9 = inlined_call_operand.vmem [shape: f32[1,256], index: 9, kind: input, shape index: {}]   ;;  %s3740_s10 = inlined_call_operand.<no memory space> [shape: f32[1,1], index: 10, kind: input, shape index: {}]   ;;  %s3741_s11 = inlined_call_operand.hbm [shape: f32[1,128], index: 11, kind: output, shape index: {}]  }
   0x1   :  { %18 = vsyncpa [#allocation7], 0 }
   0x2   :  { %19 = vsyncpa [#allocation5], 0  ;;  %s3031_s17 = smov [#allocation3]   ;;  %s2959_s21 = scalar_lea.hbm %s3734_s4, 8192 }
   0x3   :  { %s33_s18 = sshll.u32 %s3031_s17, 4  ;;  %p2960_p0 = scmp.ne.s32.totalorder %s3734_s4, %s2959_s21  ;;  %s34_s18 = int_to_ptr.vmem [resolvable:$true] %s33_s18 }
   0x4   :  { %p2963_p1 = scmp.lt.u32.totalorder %s2959_s21, %s3734_s4 }
   0x6   :  { %p2965_p2 = pnand %p2963_p1, %p2960_p0 }
   0x8   :  { %2968 = shalt.err (!%p2965_p2)
}
   0x9   :  { %s2969_s26 = scalar_lea.vmem %s34_s18, 8192  ;;  %p2974_p4 = scmp.lt.s32.totalorder %s34_s18, %s34_s18 }
   0xa   :  { %p2970_p3 = scmp.ne.s32.totalorder %s34_s18, %s2969_s26  ;;  %p2975_p5 = scmp.lt.s32.totalorder %s2969_s26, %s2969_s26 }
   0xc   :  { %p2976_p6 = por %p2975_p5, %p2974_p4 }
   0xe   :  { %p2977_p7 = pnand %p2976_p6, %p2970_p3 }
  0x10   :  { %2980 = shalt.err (!%p2977_p7)
}
  0x11   :  { %s3032_s27 = smov 256   ;;  %s3033_s28 = smov 16  }
  0x12   :  { %39 = dma.hbm_to_vmem [thread:$0]  %s3734_s4, 8192, %s34_s18, [#allocation4], %s3032_s27, %s3032_s27, %s3033_s28  }
  0x13   :  { %s3034_s12 = smov [#allocation6]   ;;  %s2981_s16 = scalar_lea.hbm %s3737_s7, 8192 }
  0x14   :  { %s49_s13 = sshll.u32 %s3034_s12, 4  ;;  %p2982_p8 = scmp.ne.s32.totalorder %s3737_s7, %s2981_s16  ;;  %s50_s13 = int_to_ptr.vmem [resolvable:$true] %s49_s13 }
  0x15   :  { %p2985_p9 = scmp.lt.u32.totalorder %s2981_s16, %s3737_s7 }
  0x17   :  { %p2987_p10 = pnand %p2985_p9, %p2982_p8 }
  0x19   :  { %2990 = shalt.err (!%p2987_p10)
}
  0x1a   :  { %s2991_s22 = scalar_lea.vmem %s50_s13, 8192  ;;  %p2996_p12 = scmp.lt.s32.totalorder %s50_s13, %s50_s13 }
  0x1b   :  { %p2992_p11 = scmp.ne.s32.totalorder %s50_s13, %s2991_s22  ;;  %p2997_p13 = scmp.lt.s32.totalorder %s2991_s22, %s2991_s22 }
  0x1d   :  { %p2998_p0 = por %p2997_p13, %p2996_p12 }
  0x1f   :  { %p2999_p1 = pnand %p2998_p0, %p2992_p11 }
  0x21   :  { %3002 = shalt.err (!%p2999_p1)
}
  0x22   :  { %s3035_s4 = smov 128   ;;  %s3036_s18 = smov 8  }
  0x23   :  { %55 = dma.hbm_to_vmem [thread:$0]  %s3737_s7, 8192, %s50_s13, [#allocation7], %s3035_s4, %s3035_s4, %s3036_s18  }
  0x24   :  { %3025 = dma.done.wait [#allocation4], 8192  }
  0x25   :  { %3026 = vsyncadd [#allocation4], 4294959104 }
  0x26   :  { %3027 = dma.done.wait [#allocation7], 8192  }
  0x27   :  { %3028 = vsyncadd [#allocation7], 4294959104  ;;  %v3037_v0 = vmov 0   ;;  %v2760_v1 = vld [vmem:[%s3732_s2 + $0x4] ss:$8 sps:$4 sm:$0xff]   ;;  %vm141_vm0 = vcmask 130048  }
  0x28   :  { %198 = vmatprep.mubr.bf16.mxu0 %v3037_v0  ;;  %505 = vmatprep.mubr.bf16.mxu1 %v3037_v0  ;;  %v2762_v2 = vld [vmem:[%s3732_s2] ss:$8 sps:$4 sm:$0xff]   ;;  %v71_v6 = vld [vmem:[%s3730_s0 + $0x10] sm:$0xff]  ;;  %v72_v7 = vld [vmem:[%s3730_s0 + $0x18] sm:$0xff]  ;;  %vm460_vm1 = vcmask 1043456   ;;  %vm435_vm2 = vcmask 64512  }
  0x29   :  { %v69_v3 = vld [vmem:[%s3730_s0] sm:$0xff]  ;;  %v70_v4 = vld [vmem:[%s3730_s0 + $0x8] sm:$0xff]  ;;  %166 = vmatprep.subr.bf16.mxu0 %v2760_v1  ;;  %v86_v18 = vpack.c.bf16 %v72_v7, %v71_v6  ;;  %v95_v27 = vld [vmem:[%s3731_s1 + $0x10] sm:$0xff]  ;;  %vm2314_vm3 = vcmask 130112   ;;  %vm2321_vm4 = vcmask 195712   ;;  %vm2328_vm5 = vcmask 261312  }
  0x2a   :  { %v85_v5 = vpack.c.bf16 %v70_v4, %v69_v3  ;;  %167 = vmatpush1.bf16.msra.mxu0 %v2762_v2  ;;  %v424_v8 = vld [vmem:[%s3735_s5 + $0x8] sm:$0xff]  ;;  %v423_v11 = vld [vmem:[%s3735_s5] sm:$0xff]  ;;  %v96_v28 = vld [vmem:[%s3731_s1 + $0x18] sm:$0xff]  ;;  %vm2335_vm6 = vcmask 326912   ;;  %vm2342_vm7 = vcmask 392512   ;;  %vm2349_vm8 = vcmask 458112  }
  0x2b   :  { %v2445_v9 = vcombine.high %v424_v8, %v424_v8  ;;  %v2444_v10 = vcombine.low %v424_v8, %v424_v8  ;;  %v2443_v12 = vcombine.high %v423_v11, %v423_v11  ;;  %v2442_v13 = vcombine.low %v423_v11, %v423_v11  ;;  %v2769_v14 = vld [vmem:[#allocation3 + $0x4] ss:$16 sps:$4 sm:$0xff]   ;;  %v94_v17 = vld [vmem:[%s3731_s1 + $0x8] sm:$0xff]  ;;  %v2767_v22 = vld [vmem:[#allocation3] ss:$16 sps:$4 sm:$0xff]  }
  0x2c   :  { %v93_v15 = vld [vmem:[%s3731_s1] sm:$0xff]  ;;  %v2772_v21 = vld [vmem:[#allocation3 + $0xc] ss:$16 sps:$4 sm:$0xff]   ;;  %v3176_v31 = vpack.c.bf16 %v96_v28, %v95_v27  ;;  %v75_v34 = vld [vmem:[%s3730_s0 + $0x30] sm:$0xff]  ;;  %vm2356_vm9 = vcmask 523712   ;;  %vm2363_vm10 = vcmask 589312  }
  0x2d   :  { %2434 = vmatmul.mubr.msk.bf16.vlgmr.msra.gmra.mrb[0].mxu0 %vm141_vm0, %v85_v5  ;;  %2455 = vmatprep.subr.msk.bf16.mxu0 %vm460_vm1, %v2445_v9  ;;  %v468_v16 = vsel %vm460_vm1, %v2444_v10, 0  ;;  %v462_v19 = vsel %vm460_vm1, %v2442_v13, 0  ;;  %v3157_v20 = vpack.c.bf16 %v94_v17, %v93_v15  ;;  %v2775_v23 = vld [vmem:[#allocation3 + $0x24] ss:$16 sps:$4 sm:$0xff]   ;;  %v74_v25 = vld [vmem:[%s3730_s0 + $0x28] sm:$0xff]  ;;  %v76_v35 = vld [vmem:[%s3730_s0 + $0x38] sm:$0xff] }
  0x2e   :  { %208 = vmatprep.mubr.bf16.mxu0 %v3037_v0  ;;  %587 = vmatpush1.bf16.msra.mxu0 %v468_v16  ;;  %v73_v24 = vld [vmem:[%s3730_s0 + $0x20] sm:$0xff]  ;;  %v98_v38 = vld [vmem:[%s3731_s1 + $0x28] sm:$0xff]  ;;  %v88_v40 = vpack.c.bf16 %v76_v35, %v75_v34  ;;  %v99_v47 = vld [vmem:[%s3731_s1 + $0x30] sm:$0xff]  ;;  %vm2370_vm11 = vcmask 654912   ;;  %vm2377_vm12 = vcmask 720512   ;;  %vm2384_vm13 = vcmask 786112  }
  0x2f   :  { %2446 = vmatprep.subr.msk.bf16.mxu1 %vm460_vm1, %v2443_v12  ;;  %1132 = vmatprep.subr.bf16.mxu0 %v2772_v21  ;;  %v2773_v26 = vld [vmem:[#allocation3 + $0x20] ss:$16 sps:$4 sm:$0xff]   ;;  %v2781_v29 = vld [vmem:[#allocation3 + $0x44] ss:$16 sps:$4 sm:$0xff]   ;;  %v87_v30 = vpack.c.bf16 %v74_v25, %v73_v24  ;;  %v78_v45 = vld [vmem:[%s3730_s0 + $0x48] sm:$0xff]  ;;  %vm2391_vm14 = vcmask 851712  }
  0x30   :  { %474 = vmatpush1.bf16.msra.mxu1 %v462_v19  ;;  %v2779_v32 = vld [vmem:[#allocation3 + $0x40] ss:$16 sps:$4 sm:$0xff]   ;;  %v2787_v33 = vld [vmem:[#allocation3 + $0x64] ss:$16 sps:$4 sm:$0xff]   ;;  %v100_v48 = vld [vmem:[%s3731_s1 + $0x38] sm:$0xff]  ;;  %vm2398_vm15 = vcmask 917312  }
  0x31   :  { %1019 = vmatprep.subr.bf16.mxu1 %v2769_v14  ;;  %v2785_v36 = vld [vmem:[#allocation3 + $0x60] ss:$16 sps:$4 sm:$0xff]   ;;  %v2793_v39 = vld [vmem:[#allocation3 + $0x84] ss:$16 sps:$4 sm:$0xff]   ;;  %v3214_v51 = vpack.c.bf16 %v100_v48, %v99_v47  ;;  %v80_v55 = vld [vmem:[%s3730_s0 + $0x58] sm:$0xff]  ;;  %vm2412_vm1 = vcmask 1048512  }
  0x32   :  { %v97_v37 = vld [vmem:[%s3731_s1 + $0x20] sm:$0xff]  ;;  %v79_v54 = vld [vmem:[%s3730_s0 + $0x50] sm:$0xff]  ;;  %v102_v58 = vld [vmem:[%s3731_s1 + $0x48] sm:$0xff] }
  0x33   :  { %2447 = vmatmul.mubr.msk.bf16.vlgmr.msra.gmra.mrb[0].mxu1 %vm435_vm2, %v3157_v20  ;;  %v3195_v41 = vpack.c.bf16 %v98_v38, %v97_v37  ;;  %v2791_v42 = vld [vmem:[#allocation3 + $0x80] ss:$16 sps:$4 sm:$0xff]   ;;  %v2799_v43 = vld [vmem:[#allocation3 + $0xa4] ss:$16 sps:$4 sm:$0xff]   ;;  %v90_v60 = vpack.c.bf16 %v80_v55, %v79_v54  ;;  %v82_v2 = vld [vmem:[%s3730_s0 + $0x68] sm:$0xff] }
  0x34   :  { %1020 = vmatpush1.bf16.msra.mxu1 %v2767_v22  ;;  %515 = vmatprep.mubr.bf16.mxu1 %v3037_v0  ;;  %v77_v44 = vld [vmem:[%s3730_s0 + $0x40] sm:$0xff]  ;;  %v103_v5 = vld [vmem:[%s3731_s1 + $0x50] sm:$0xff]  ;;  %v104_v6 = vld [vmem:[%s3731_s1 + $0x58] sm:$0xff] }
  0x35   :  { %2435 = vmatmul.mubr.msk.bf16.gmra.mrb[4].mxu0 %vm141_vm0, %v86_v18  ;;  %1021 = vmatprep.subr.bf16.mxu1 %v2775_v23  ;;  %v2797_v46 = vld [vmem:[#allocation3 + $0xa0] ss:$16 sps:$4 sm:$0xff]   ;;  %v2805_v49 = vld [vmem:[#allocation3 + $0xc4] ss:$16 sps:$4 sm:$0xff]   ;;  %v89_v50 = vpack.c.bf16 %v78_v45, %v77_v44  ;;  %v3252_v9 = vpack.c.bf16 %v104_v6, %v103_v5  ;;  %v84_v12 = vld [vmem:[%s3730_s0 + $0x78] sm:$0xff] }
  0x36   :  { %218 = vmatprep.mubr.bf16.mxu0 %v3037_v0  ;;  %v2803_v52 = vld [vmem:[#allocation3 + $0xc0] ss:$16 sps:$4 sm:$0xff]   ;;  %v2811_v53 = vld [vmem:[#allocation3 + $0xe4] ss:$16 sps:$4 sm:$0xff]   ;;  %v106_v15 = vld [vmem:[%s3731_s1 + $0x68] sm:$0xff] }
  0x37   :  { %v2809_v56 = vld [vmem:[#allocation3 + $0xe0] ss:$16 sps:$4 sm:$0xff]   ;;  %v2817_v59 = vld [vmem:[#allocation3 + $0x104] ss:$16 sps:$4 sm:$0xff]   ;;  %v2770_v21 = vld [vmem:[#allocation3 + $0x8] ss:$16 sps:$4 sm:$0xff]  }
  0x38   :  { %1022 = vmatpush1.bf16.msra.mxu1 %v2773_v26  ;;  %v101_v57 = vld [vmem:[%s3731_s1 + $0x40] sm:$0xff]  ;;  %v83_v11 = vld [vmem:[%s3730_s0 + $0x70] sm:$0xff]  ;;  %v2778_v22 = vld [vmem:[#allocation3 + $0x2c] ss:$16 sps:$4 sm:$0xff]  }
  0x39   :  { %1023 = vmatprep.subr.bf16.mxu1 %v2781_v29  ;;  %v3233_v61 = vpack.c.bf16 %v102_v58, %v101_v57  ;;  %v2815_v62 = vld [vmem:[#allocation3 + $0x100] ss:$16 sps:$4 sm:$0xff]   ;;  %v2823_v63 = vld [vmem:[#allocation3 + $0x124] ss:$16 sps:$4 sm:$0xff]   ;;  %v92_v18 = vpack.c.bf16 %v84_v12, %v83_v11  ;;  %v2776_v23 = vld [vmem:[#allocation3 + $0x28] ss:$16 sps:$4 sm:$0xff]  }
  0x3a   :  { %v81_v1 = vld [vmem:[%s3730_s0 + $0x60] sm:$0xff]  ;;  %v2784_v24 = vld [vmem:[#allocation3 + $0x4c] ss:$16 sps:$4 sm:$0xff]   ;;  %v2782_v25 = vld [vmem:[#allocation3 + $0x48] ss:$16 sps:$4 sm:$0xff]  }
  0x3b   :  { %2448 = vmatmul.mubr.msk.bf16.gmra.mrb[4].mxu1 %vm435_vm2, %v3176_v31  ;;  %v2821_v3 = vld [vmem:[#allocation3 + $0x120] ss:$16 sps:$4 sm:$0xff]   ;;  %v2829_v4 = vld [vmem:[#allocation3 + $0x144] ss:$16 sps:$4 sm:$0xff]   ;;  %v91_v8 = vpack.c.bf16 %v82_v2, %v81_v1  ;;  %v2790_v26 = vld [vmem:[#allocation3 + $0x6c] ss:$16 sps:$4 sm:$0xff]  }
  0x3c   :  { %1024 = vmatpush1.bf16.msra.mxu1 %v2779_v32  ;;  %525 = vmatprep.mubr.bf16.mxu1 %v3037_v0  ;;  %v2827_v7 = vld [vmem:[#allocation3 + $0x140] ss:$16 sps:$4 sm:$0xff]   ;;  %v2835_v10 = vld [vmem:[#allocation3 + $0x164] ss:$16 sps:$4 sm:$0xff]   ;;  %v2788_v27 = vld [vmem:[#allocation3 + $0x68] ss:$16 sps:$4 sm:$0xff]  }
  0x3d   :  { %2436 = vmatmul.mubr.msk.bf16.gmra.mrb[8].mxu0 %vm141_vm0, %v87_v30  ;;  %1025 = vmatprep.subr.bf16.mxu1 %v2787_v33  ;;  %v2833_v13 = vld [vmem:[#allocation3 + $0x160] ss:$16 sps:$4 sm:$0xff]   ;;  %v2841_v16 = vld [vmem:[#allocation3 + $0x184] ss:$16 sps:$4 sm:$0xff]   ;;  %v2796_v28 = vld [vmem:[#allocation3 + $0x8c] ss:$16 sps:$4 sm:$0xff]  }
  0x3e   :  { %228 = vmatprep.mubr.bf16.mxu0 %v3037_v0  ;;  %v105_v14 = vld [vmem:[%s3731_s1 + $0x60] sm:$0xff]  ;;  %v2802_v29 = vld [vmem:[#allocation3 + $0xac] ss:$16 sps:$4 sm:$0xff]   ;;  %v2800_v30 = vld [vmem:[#allocation3 + $0xa8] ss:$16 sps:$4 sm:$0xff]  }
  0x3f   :  { %v2839_v17 = vld [vmem:[#allocation3 + $0x180] ss:$16 sps:$4 sm:$0xff]   ;;  %v3271_v19 = vpack.c.bf16 %v106_v15, %v105_v14  ;;  %v2808_v32 = vld [vmem:[#allocation3 + $0xcc] ss:$16 sps:$4 sm:$0xff]   ;;  %v2806_v34 = vld [vmem:[#allocation3 + $0xc8] ss:$16 sps:$4 sm:$0xff]  }
  0x40   :  { %1026 = vmatpush1.bf16.msra.mxu1 %v2785_v36  ;;  %v2845_v33 = vld [vmem:[#allocation3 + $0x1a0] ss:$16 sps:$4 sm:$0xff]   ;;  %v108_v36 = vld [vmem:[%s3731_s1 + $0x78] sm:$0xff]  ;;  %v2853_v38 = vld [vmem:[#allocation3 + $0x1c4] ss:$16 sps:$4 sm:$0xff]  }
  0x41   :  { %1027 = vmatprep.subr.bf16.mxu1 %v2793_v39  ;;  %v107_v35 = vld [vmem:[%s3731_s1 + $0x70] sm:$0xff]  ;;  %v2814_v37 = vld [vmem:[#allocation3 + $0xec] ss:$16 sps:$4 sm:$0xff]   ;;  %v2818_v45 = vld [vmem:[#allocation3 + $0x108] ss:$16 sps:$4 sm:$0xff]  }
  0x42   :  { %v116_v39 = vpack.c.bf16 %v108_v36, %v107_v35  ;;  %v2857_v44 = vld [vmem:[#allocation3 + $0x1e0] ss:$16 sps:$4 sm:$0xff]   ;;  %v2824_v47 = vld [vmem:[#allocation3 + $0x128] ss:$16 sps:$4 sm:$0xff]   ;;  %v2832_v48 = vld [vmem:[#allocation3 + $0x14c] ss:$16 sps:$4 sm:$0xff]  }
  0x43   :  { %2449 = vmatmul.mubr.msk.bf16.gmra.mrb[8].mxu1 %vm435_vm2, %v3195_v41  ;;  %v2850_v54 = vld [vmem:[#allocation3 + $0x1ac] ss:$16 sps:$4 sm:$0xff]   ;;  %v2848_v55 = vld [vmem:[#allocation3 + $0x1a8] ss:$16 sps:$4 sm:$0xff]   ;;  %v119_v1 = vld [vmem:[%s3733_s3] sm:$0x3] }
  0x44   :  { %1028 = vmatpush1.bf16.msra.mxu1 %v2791_v42  ;;  %535 = vmatprep.mubr.bf16.mxu1 %v3037_v0  ;;  %v2820_v42 = vld [vmem:[#allocation3 + $0x10c] ss:$16 sps:$4 sm:$0xff]   ;;  %v2854_v57 = vld [vmem:[#allocation3 + $0x1c8] ss:$16 sps:$4 sm:$0xff]  }
  0x45   :  { %2437 = vmatmul.mubr.msk.bf16.gmra.mrb[12].mxu0 %vm141_vm0, %v88_v40  ;;  %1029 = vmatprep.subr.bf16.mxu1 %v2799_v43  ;;  %v2851_v40 = vld [vmem:[#allocation3 + $0x1c0] ss:$16 sps:$4 sm:$0xff]   ;;  %v2859_v43 = vld [vmem:[#allocation3 + $0x1e4] ss:$16 sps:$4 sm:$0xff]   ;;  %v2862_v58 = vld [vmem:[#allocation3 + $0x1ec] ss:$16 sps:$4 sm:$0xff]  }
  0x46   :  { %238 = vmatprep.mubr.bf16.mxu0 %v3037_v0 }
  0x48   :  { %1030 = vmatpush1.bf16.msra.mxu1 %v2797_v46  ;;  %v2826_v46 = vld [vmem:[#allocation3 + $0x12c] ss:$16 sps:$4 sm:$0xff]  }
  0x49   :  { %1031 = vmatprep.subr.bf16.mxu1 %v2805_v49  ;;  %v2830_v49 = vld [vmem:[#allocation3 + $0x148] ss:$16 sps:$4 sm:$0xff]  }
  0x4b   :  { %2450 = vmatmul.mubr.msk.bf16.gmra.mrb[12].mxu1 %vm435_vm2, %v3214_v51 }
  0x4c   :  { %1032 = vmatpush1.bf16.msra.mxu1 %v2803_v52  ;;  %545 = vmatprep.mubr.bf16.mxu1 %v3037_v0  ;;  %v2844_v52 = vld [vmem:[#allocation3 + $0x18c] ss:$16 sps:$4 sm:$0xff]  }
  0x4d   :  { %2438 = vmatmul.mubr.msk.bf16.gmra.mrb[16].mxu0 %vm141_vm0, %v89_v50  ;;  %1033 = vmatprep.subr.bf16.mxu1 %v2811_v53  ;;  %v2838_v50 = vld [vmem:[#allocation3 + $0x16c] ss:$16 sps:$4 sm:$0xff]   ;;  %v2842_v53 = vld [vmem:[#allocation3 + $0x188] ss:$16 sps:$4 sm:$0xff]  }
  0x4e   :  { %248 = vmatprep.mubr.bf16.mxu0 %v3037_v0 }
  0x50   :  { %1034 = vmatpush1.bf16.msra.mxu1 %v2809_v56  ;;  %v2856_v56 = vld [vmem:[#allocation3 + $0x1cc] ss:$16 sps:$4 sm:$0xff]  }
  0x51   :  { %1035 = vmatprep.subr.bf16.mxu1 %v2817_v59  ;;  %v2860_v59 = vld [vmem:[#allocation3 + $0x1e8] ss:$16 sps:$4 sm:$0xff]  }
  0x53   :  { %2451 = vmatmul.mubr.msk.bf16.gmra.mrb[16].mxu1 %vm435_vm2, %v3233_v61 }
  0x54   :  { %1036 = vmatpush1.bf16.msra.mxu1 %v2815_v62  ;;  %555 = vmatprep.mubr.bf16.mxu1 %v3037_v0  ;;  %v3742_v62 = vlaneseq }
  0x55   :  { %2439 = vmatmul.mubr.msk.bf16.gmra.mrb[20].mxu0 %vm141_vm0, %v90_v60  ;;  %1037 = vmatprep.subr.bf16.mxu1 %v2823_v63  ;;  %v2865_v60 = vld [vmem:[#allocation6 + $0x4] ss:$8 sps:$4 sm:$0xff]  }
  0x56   :  { %258 = vmatprep.mubr.bf16.mxu0 %v3037_v0 }
  0x58   :  { %1038 = vmatpush1.bf16.msra.mxu1 %v2821_v3 }
  0x59   :  { %1039 = vmatprep.subr.bf16.mxu1 %v2829_v4 }
  0x5b   :  { %2452 = vmatmul.mubr.msk.bf16.gmra.mrb[20].mxu1 %vm435_vm2, %v3252_v9 }
  0x5c   :  { %1040 = vmatpush1.bf16.msra.mxu1 %v2827_v7  ;;  %565 = vmatprep.mubr.bf16.mxu1 %v3037_v0 }
  0x5d   :  { %2440 = vmatmul.mubr.msk.bf16.gmra.mrb[24].mxu0 %vm141_vm0, %v91_v8  ;;  %1041 = vmatprep.subr.bf16.mxu1 %v2835_v10 }
  0x5e   :  { %268 = vmatprep.mubr.bf16.mxu0 %v3037_v0 }
  0x60   :  { %1042 = vmatpush1.bf16.msra.mxu1 %v2833_v13 }
  0x61   :  { %1043 = vmatprep.subr.bf16.mxu1 %v2841_v16 }
  0x63   :  { %2453 = vmatmul.mubr.msk.bf16.gmra.mrb[24].mxu1 %vm435_vm2, %v3271_v19 }
  0x64   :  { %1044 = vmatpush1.bf16.msra.mxu1 %v2839_v17  ;;  %575 = vmatprep.mubr.bf16.mxu1 %v3037_v0 }
  0x65   :  { %2441 = vmatmul.mubr.msk.bf16.gmra.mrb[28].mxu0 %vm141_vm0, %v92_v18  ;;  %vm2405_vm0 = vcmask 982912  }
  0x66   :  { %618 = vmatprep.mubr.bf16.mxu0 %v3037_v0 }
  0x6b   :  { %2454 = vmatmul.mubr.msk.bf16.gmra.mrb[28].mxu1 %vm435_vm2, %v116_v39 }
  0x6d   :  { %2456 = vmatmul.mubr.msk.bf16.vlgmr.msra.gmra.mrb[32].mxu0 %vm435_vm2, %v3157_v20  ;;  %v2794_v20 = vld [vmem:[#allocation3 + $0x88] ss:$16 sps:$4 sm:$0xff]  }
  0x6e   :  { %1133 = vmatpush1.bf16.msra.mxu0 %v2770_v21  ;;  %628 = vmatprep.mubr.bf16.mxu0 %v3037_v0 }
  0x6f   :  { %1134 = vmatprep.subr.bf16.mxu0 %v2778_v22 }
  0x72   :  { %1135 = vmatpush1.bf16.msra.mxu0 %v2776_v23 }
  0x73   :  { %1136 = vmatprep.subr.bf16.mxu0 %v2784_v24 }
  0x75   :  { %2457 = vmatmul.mubr.msk.bf16.gmra.mrb[36].mxu0 %vm435_vm2, %v3176_v31  ;;  %v2847_v31 = vld [vmem:[#allocation3 + $0x1a4] ss:$16 sps:$4 sm:$0xff]  }
  0x76   :  { %1137 = vmatpush1.bf16.msra.mxu0 %v2782_v25  ;;  %638 = vmatprep.mubr.bf16.mxu0 %v3037_v0 }
  0x77   :  { %1138 = vmatprep.subr.bf16.mxu0 %v2790_v26  ;;  %1045 = vmatprep.subr.bf16.mxu1 %v2847_v31  ;;  %v2863_v26 = vld [vmem:[#allocation6] ss:$8 sps:$4 sm:$0xff]  }
  0x78   :  { %1046 = vmatpush1.bf16.msra.mxu1 %v2845_v33 }
  0x79   :  { %1047 = vmatprep.subr.bf16.mxu1 %v2853_v38 }
  0x7a   :  { %1139 = vmatpush1.bf16.msra.mxu0 %v2788_v27 }
  0x7b   :  { %1140 = vmatprep.subr.bf16.mxu0 %v2796_v28 }
  0x7c   :  { %1048 = vmatpush1.bf16.msra.mxu1 %v2851_v40  ;;  %v3341_v40 = vld [vmem:[#allocation6 + $0x110] ss:$8 sps:$4 sm:$0xff]  }
  0x7d   :  { %2458 = vmatmul.mubr.msk.bf16.gmra.mrb[40].mxu0 %vm435_vm2, %v3195_v41  ;;  %v2812_v41 = vld [vmem:[#allocation3 + $0xe8] ss:$16 sps:$4 sm:$0xff]   ;;  %1049 = vmatprep.subr.bf16.mxu1 %v2859_v43  ;;  %v2877_v43 = vld [vmem:[#allocation6 + $0x24] ss:$8 sps:$4 sm:$0xff]  }
  0x7e   :  { %1141 = vmatpush1.bf16.msra.mxu0 %v2794_v20  ;;  %648 = vmatprep.mubr.bf16.mxu0 %v3037_v0 }
  0x7f   :  { %1142 = vmatprep.subr.bf16.mxu0 %v2802_v29  ;;  %v3334_v29 = vld [vmem:[#allocation6 + $0x100] ss:$8 sps:$4 sm:$0xff]  }
  0x80   :  { %1050 = vmatpush1.bf16.msra.mxu1 %v2857_v44  ;;  %v3344_v44 = vld [vmem:[#allocation6 + $0x124] ss:$8 sps:$4 sm:$0xff]  }
  0x81   :  { %1887 = vmatprep.subr.bf16.mxu1 %v2865_v60  ;;  %v3353_v60 = vld [vmem:[#allocation6 + $0x134] ss:$8 sps:$4 sm:$0xff]  }
  0x82   :  { %1143 = vmatpush1.bf16.msra.mxu0 %v2800_v30  ;;  %v2871_v30 = vld [vmem:[#allocation6 + $0x14] ss:$8 sps:$4 sm:$0xff]  }
  0x83   :  { %1144 = vmatprep.subr.bf16.mxu0 %v2808_v32 }
  0x85   :  { %2459 = vmatmul.mubr.msk.bf16.gmra.mrb[44].mxu0 %vm435_vm2, %v3214_v51  ;;  %v2836_v51 = vld [vmem:[#allocation3 + $0x168] ss:$16 sps:$4 sm:$0xff]  }
  0x86   :  { %1145 = vmatpush1.bf16.msra.mxu0 %v2806_v34  ;;  %658 = vmatprep.mubr.bf16.mxu0 %v3037_v0  ;;  %v3337_v34 = vld [vmem:[#allocation6 + $0x114] ss:$8 sps:$4 sm:$0xff]  }
  0x87   :  { %1146 = vmatprep.subr.bf16.mxu0 %v2814_v37 }
  0x8a   :  { %1147 = vmatpush1.bf16.msra.mxu0 %v2812_v41 }
  0x8b   :  { %1148 = vmatprep.subr.bf16.mxu0 %v2820_v42 }
  0x8d   :  { %2460 = vmatmul.mubr.msk.bf16.gmra.mrb[48].mxu0 %vm435_vm2, %v3233_v61  ;;  %v3307_v61 = vld [vmem:[#allocation6 + $0x104] ss:$8 sps:$4 sm:$0xff]  }
  0x8e   :  { %1149 = vmatpush1.bf16.msra.mxu0 %v2818_v45  ;;  %668 = vmatprep.mubr.bf16.mxu0 %v3037_v0 }
  0x8f   :  { %1150 = vmatprep.subr.bf16.mxu0 %v2826_v46 }
  0x92   :  { %1151 = vmatpush1.bf16.msra.mxu0 %v2824_v47 }
  0x93   :  { %1152 = vmatprep.subr.bf16.mxu0 %v2832_v48 }
  0x95   :  { %2461 = vmatmul.mubr.msk.bf16.gmra.mrb[52].mxu0 %vm435_vm2, %v3252_v9 }
  0x96   :  { %1153 = vmatpush1.bf16.msra.mxu0 %v2830_v49  ;;  %678 = vmatprep.mubr.bf16.mxu0 %v3037_v0 }
  0x97   :  { %1154 = vmatprep.subr.bf16.mxu0 %v2838_v50 }
  0x9a   :  { %1155 = vmatpush1.bf16.msra.mxu0 %v2836_v51  ;;  %v2875_v51 = vld [vmem:[#allocation6 + $0x20] ss:$8 sps:$4 sm:$0xff]  }
  0x9b   :  { %1156 = vmatprep.subr.bf16.mxu0 %v2844_v52 }
  0x9d   :  { %2462 = vmatmul.mubr.msk.bf16.gmra.mrb[56].mxu0 %vm435_vm2, %v3271_v19 }
  0x9e   :  { %1157 = vmatpush1.bf16.msra.mxu0 %v2842_v53  ;;  %688 = vmatprep.mubr.bf16.mxu0 %v3037_v0  ;;  %v3311_v0 = vshrl.u32 %v3742_v62, 7 }
  0x9f   :  { %1158 = vmatprep.subr.bf16.mxu0 %v2850_v54 }
  0xa0   :  { %3753 = vst [vmem:[#allocation12_spill] sm:$0xff] %v3311_v0  ;;  %v3314_v63 = vsub.s32 0, %v3311_v0  ;;  %v3320_v2 = vsub.s32 1, %v3311_v0 }
  0xa2   :  { %1159 = vmatpush1.bf16.msra.mxu0 %v2848_v55  ;;  %3754 = vst [vmem:[#allocation13_spill] sm:$0xff] %v3314_v63  ;;  %3755 = vst [vmem:[#allocation14_spill] sm:$0xff] %v3320_v2  ;;  %v3323_v3 = vrot.slane %v119_v1, %v3314_v63  ;;  %v3326_v4 = vrot.slane %v119_v1, %v3320_v2  ;;  %v3349_v55 = vld [vmem:[#allocation6 + $0x120] ss:$8 sps:$4 sm:$0xff]  }
  0xa3   :  { %1160 = vmatprep.subr.bf16.mxu0 %v2856_v56  ;;  %v2883_v56 = vld [vmem:[#allocation6 + $0x34] ss:$8 sps:$4 sm:$0xff]  }
  0xa5   :  { %2463 = vmatmul.mubr.msk.bf16.gmra.mrb[60].mxu0 %vm435_vm2, %v116_v39  ;;  %v2869_v39 = vld [vmem:[#allocation6 + $0x10] ss:$8 sps:$4 sm:$0xff]  }
  0xa6   :  { %1161 = vmatpush1.bf16.msra.mxu0 %v2854_v57 }
  0xa7   :  { %1162 = vmatprep.subr.bf16.mxu0 %v2862_v58 }
  0xaa   :  { %1163 = vmatpush1.bf16.msra.mxu0 %v2860_v59 }
  0xab   :  { %2000 = vmatprep.subr.bf16.mxu0 %v3307_v61 }
 0x100   :  { %v200_v5 = vpop.f32.mrb[0].mxu0 }
 0x101   :  { %v201_v6 = vadd.f32 %v200_v5, %v3323_v3  ;;  %v202_v7 = vpop.f32.mrb[1].mxu0 }
 0x102   :  { %v203_v8 = vadd.f32 %v202_v7, %v3326_v4  ;;  %v204_v9 = vpop.f32.mrb[2].mxu0 }
 0x103   :  { %v279_v10 = vmul.f32 0.2, %v201_v6  ;;  %v205_v11 = vadd.f32 %v204_v9, %v3323_v3  ;;  %v206_v12 = vpop.f32.mrb[3].mxu0  ;;  %v3357_v9 = vld [vmem:[#allocation6 + $0x130] ss:$8 sps:$4 sm:$0xff]  }
 0x104   :  { %v280_v13 = vmul.f32 0.2, %v203_v8  ;;  %v207_v14 = vadd.f32 %v206_v12, %v3326_v4  ;;  %v2889_v12 = vld [vmem:[#allocation6 + $0x44] ss:$8 sps:$4 sm:$0xff]  }
 0x105   :  { %v281_v15 = vmul.f32 0.2, %v205_v11  ;;  %v311_v17 = vmax.f32 %v201_v6, %v279_v10 }
 0x106   :  { %v282_v16 = vmul.f32 0.2, %v207_v14  ;;  %v312_v19 = vmax.f32 %v203_v8, %v280_v13  ;;  %v2881_v8 = vld [vmem:[#allocation6 + $0x30] ss:$8 sps:$4 sm:$0xff]   ;;  %v3360_v13 = vld [vmem:[#allocation6 + $0x144] ss:$8 sps:$4 sm:$0xff]  }
 0x107   :  { %v313_v18 = vmax.f32 %v205_v11, %v281_v15 }
 0x108   :  { %v314_v21 = vmax.f32 %v207_v14, %v282_v16  ;;  %v210_v22 = vpop.f32.mrb[4].mxu0 }
 0x109   :  { %v343_v23 = vpack.c.bf16 %v313_v18, %v311_v17  ;;  %v211_v24 = vadd.f32 %v210_v22, %v3323_v3  ;;  %v212_v25 = vpop.f32.mrb[5].mxu0 }
 0x10a   :  { %v213_v27 = vadd.f32 %v212_v25, %v3326_v4  ;;  %v214_v28 = vpop.f32.mrb[6].mxu0  ;;  %v344_v20 = vpack.c.bf16 %v314_v21, %v312_v19  ;;  %v2887_v21 = vld [vmem:[#allocation6 + $0x40] ss:$8 sps:$4 sm:$0xff]  }
 0x10b   :  { %v283_v32 = vmul.f32 0.2, %v211_v24  ;;  %v215_v31 = vadd.f32 %v214_v28, %v3323_v3  ;;  %v216_v33 = vpop.f32.mrb[7].mxu0  ;;  %v3365_v25 = vld [vmem:[#allocation6 + $0x140] ss:$8 sps:$4 sm:$0xff]  }
 0x10c   :  { %v284_v35 = vmul.f32 0.2, %v213_v27  ;;  %v217_v36 = vadd.f32 %v216_v33, %v3326_v4  ;;  %1051 = vmatprep.mubr.bf16.mxu1 %v344_v20  ;;  %1164 = vmatprep.mubr.bf16.mxu0 %v344_v20 }
 0x10d   :  { %v285_v37 = vmul.f32 0.2, %v215_v31  ;;  %1052 = vmatmul.mubr.bf16.vlgmr.msra.gmra.mrb[0].mxu1 %v343_v23  ;;  %1165 = vmatmul.mubr.bf16.vlgmr.msra.gmra.mrb[32].mxu0 %v343_v23  ;;  %v315_v41 = vmax.f32 %v211_v24, %v283_v32 }
 0x10e   :  { %v286_v38 = vmul.f32 0.2, %v217_v36  ;;  %1888 = vmatpush1.bf16.msra.mxu1 %v2863_v26  ;;  %2001 = vmatpush1.bf16.msra.mxu0 %v3334_v29  ;;  %v316_v45 = vmax.f32 %v213_v27, %v284_v35  ;;  %v2895_v26 = vld [vmem:[#allocation6 + $0x54] ss:$8 sps:$4 sm:$0xff]  }
 0x10f   :  { %v317_v42 = vmax.f32 %v215_v31, %v285_v37  ;;  %1889 = vmatprep.subr.bf16.mxu1 %v2871_v30  ;;  %2002 = vmatprep.subr.bf16.mxu0 %v3337_v34  ;;  %v3369_v30 = vld [vmem:[#allocation6 + $0x154] ss:$8 sps:$4 sm:$0xff]   ;;  %v3373_v37 = vld [vmem:[#allocation6 + $0x150] ss:$8 sps:$4 sm:$0xff]  }
 0x110   :  { %v318_v46 = vmax.f32 %v217_v36, %v286_v38  ;;  %v220_v47 = vpop.f32.mrb[8].mxu0  ;;  %v2893_v36 = vld [vmem:[#allocation6 + $0x50] ss:$8 sps:$4 sm:$0xff]  }
 0x111   :  { %v221_v48 = vadd.f32 %v220_v47, %v3323_v3  ;;  %v222_v49 = vpop.f32.mrb[9].mxu0  ;;  %v345_v50 = vpack.c.bf16 %v317_v42, %v315_v41  ;;  %v2901_v41 = vld [vmem:[#allocation6 + $0x64] ss:$8 sps:$4 sm:$0xff]  }
 0x112   :  { %v223_v52 = vadd.f32 %v222_v49, %v3326_v4  ;;  %v224_v53 = vpop.f32.mrb[10].mxu0  ;;  %v346_v54 = vpack.c.bf16 %v318_v46, %v316_v45  ;;  %1890 = vmatpush1.bf16.msra.mxu1 %v2869_v39  ;;  %2003 = vmatpush1.bf16.msra.mxu0 %v3341_v40  ;;  %v3376_v42 = vld [vmem:[#allocation6 + $0x164] ss:$8 sps:$4 sm:$0xff]  }
 0x113   :  { %v287_v57 = vmul.f32 0.2, %v221_v48  ;;  %v225_v58 = vadd.f32 %v224_v53, %v3323_v3  ;;  %v226_v59 = vpop.f32.mrb[11].mxu0  ;;  %1891 = vmatprep.subr.bf16.mxu1 %v2877_v43  ;;  %2004 = vmatprep.subr.bf16.mxu0 %v3344_v44 }
 0x114   :  { %v288_v1 = vmul.f32 0.2, %v223_v52  ;;  %v227_v5 = vadd.f32 %v226_v59, %v3326_v4  ;;  %1061 = vmatprep.mubr.bf16.mxu1 %v346_v54  ;;  %1174 = vmatprep.mubr.bf16.mxu0 %v346_v54  ;;  %v3381_v54 = vld [vmem:[#allocation6 + $0x160] ss:$8 sps:$4 sm:$0xff]  }
 0x115   :  { %v289_v6 = vmul.f32 0.2, %v225_v58  ;;  %1062 = vmatmul.mubr.bf16.gmra.mrb[4].mxu1 %v345_v50  ;;  %1175 = vmatmul.mubr.bf16.gmra.mrb[36].mxu0 %v345_v50  ;;  %v319_v10 = vmax.f32 %v221_v48, %v287_v57  ;;  %v2899_v50 = vld [vmem:[#allocation6 + $0x60] ss:$8 sps:$4 sm:$0xff]  }
 0x116   :  { %v290_v7 = vmul.f32 0.2, %v227_v5  ;;  %1892 = vmatpush1.bf16.msra.mxu1 %v2875_v51  ;;  %2005 = vmatpush1.bf16.msra.mxu0 %v3349_v55  ;;  %v320_v14 = vmax.f32 %v223_v52, %v288_v1  ;;  %v3385_v1 = vld [vmem:[#allocation6 + $0x174] ss:$8 sps:$4 sm:$0xff]  }
 0x117   :  { %v321_v11 = vmax.f32 %v225_v58, %v289_v6  ;;  %1893 = vmatprep.subr.bf16.mxu1 %v2883_v56  ;;  %2006 = vmatprep.subr.bf16.mxu0 %v3353_v60  ;;  %v2907_v56 = vld [vmem:[#allocation6 + $0x74] ss:$8 sps:$4 sm:$0xff]  }
 0x118   :  { %v322_v15 = vmax.f32 %v227_v5, %v290_v7  ;;  %v230_v16 = vpop.f32.mrb[12].mxu0 }
 0x119   :  { %v231_v17 = vadd.f32 %v230_v16, %v3323_v3  ;;  %v232_v18 = vpop.f32.mrb[13].mxu0  ;;  %v347_v19 = vpack.c.bf16 %v321_v11, %v319_v10  ;;  %v2905_v10 = vld [vmem:[#allocation6 + $0x70] ss:$8 sps:$4 sm:$0xff]   ;;  %v3392_v16 = vld [vmem:[#allocation6 + $0x184] ss:$8 sps:$4 sm:$0xff]  }
 0x11a   :  { %v233_v22 = vadd.f32 %v232_v18, %v3326_v4  ;;  %v234_v23 = vpop.f32.mrb[14].mxu0  ;;  %v348_v24 = vpack.c.bf16 %v322_v15, %v320_v14  ;;  %1894 = vmatpush1.bf16.msra.mxu1 %v2881_v8  ;;  %2007 = vmatpush1.bf16.msra.mxu0 %v3357_v9  ;;  %v3389_v11 = vld [vmem:[#allocation6 + $0x170] ss:$8 sps:$4 sm:$0xff]   ;;  %v2913_v15 = vld [vmem:[#allocation6 + $0x84] ss:$8 sps:$4 sm:$0xff]  }
 0x11b   :  { %v291_v27 = vmul.f32 0.2, %v231_v17  ;;  %v235_v28 = vadd.f32 %v234_v23, %v3323_v3  ;;  %v236_v20 = vpop.f32.mrb[15].mxu0  ;;  %1895 = vmatprep.subr.bf16.mxu1 %v2889_v12  ;;  %2008 = vmatprep.subr.bf16.mxu0 %v3360_v13 }
 0x11c   :  { %v292_v32 = vmul.f32 0.2, %v233_v22  ;;  %v237_v31 = vadd.f32 %v236_v20, %v3326_v4  ;;  %1071 = vmatprep.mubr.bf16.mxu1 %v348_v24  ;;  %1184 = vmatprep.mubr.bf16.mxu0 %v348_v24  ;;  %v2911_v24 = vld [vmem:[#allocation6 + $0x80] ss:$8 sps:$4 sm:$0xff]  }
 0x11d   :  { %v293_v33 = vmul.f32 0.2, %v235_v28  ;;  %1072 = vmatmul.mubr.bf16.gmra.mrb[8].mxu1 %v347_v19  ;;  %1185 = vmatmul.mubr.bf16.gmra.mrb[40].mxu0 %v347_v19  ;;  %v323_v38 = vmax.f32 %v231_v17, %v291_v27  ;;  %v3397_v20 = vld [vmem:[#allocation6 + $0x180] ss:$8 sps:$4 sm:$0xff]  }
 0x11e   :  { %v294_v35 = vmul.f32 0.2, %v237_v31  ;;  %1896 = vmatpush1.bf16.msra.mxu1 %v2887_v21  ;;  %2009 = vmatpush1.bf16.msra.mxu0 %v3365_v25  ;;  %v324_v43 = vmax.f32 %v233_v22, %v292_v32  ;;  %v2919_v32 = vld [vmem:[#allocation6 + $0x94] ss:$8 sps:$4 sm:$0xff]  }
 0x11f   :  { %v325_v39 = vmax.f32 %v235_v28, %v293_v33  ;;  %1897 = vmatprep.subr.bf16.mxu1 %v2895_v26  ;;  %2010 = vmatprep.subr.bf16.mxu0 %v3369_v30 }
 0x120   :  { %v326_v45 = vmax.f32 %v237_v31, %v294_v35  ;;  %v240_v46 = vpop.f32.mrb[16].mxu0 }
 0x121   :  { %v241_v47 = vadd.f32 %v240_v46, %v3323_v3  ;;  %v242_v48 = vpop.f32.mrb[17].mxu0  ;;  %v349_v49 = vpack.c.bf16 %v325_v39, %v323_v38  ;;  %v3405_v46 = vld [vmem:[#allocation6 + $0x190] ss:$8 sps:$4 sm:$0xff]  }
 0x122   :  { %v243_v51 = vadd.f32 %v242_v48, %v3326_v4  ;;  %v244_v52 = vpop.f32.mrb[18].mxu0  ;;  %v350_v53 = vpack.c.bf16 %v326_v45, %v324_v43  ;;  %1898 = vmatpush1.bf16.msra.mxu1 %v2893_v36  ;;  %2011 = vmatpush1.bf16.msra.mxu0 %v3373_v37  ;;  %v3401_v36 = vld [vmem:[#allocation6 + $0x194] ss:$8 sps:$4 sm:$0xff]   ;;  %v2917_v45 = vld [vmem:[#allocation6 + $0x90] ss:$8 sps:$4 sm:$0xff]  }
 0x123   :  { %v295_v57 = vmul.f32 0.2, %v241_v47  ;;  %v245_v58 = vadd.f32 %v244_v52, %v3323_v3  ;;  %v246_v59 = vpop.f32.mrb[19].mxu0  ;;  %1899 = vmatprep.subr.bf16.mxu1 %v2901_v41  ;;  %2012 = vmatprep.subr.bf16.mxu0 %v3376_v42 }
 0x124   :  { %v296_v5 = vmul.f32 0.2, %v243_v51  ;;  %v247_v6 = vadd.f32 %v246_v59, %v3326_v4  ;;  %1081 = vmatprep.mubr.bf16.mxu1 %v350_v53  ;;  %1194 = vmatprep.mubr.bf16.mxu0 %v350_v53  ;;  %v2923_v59 = vld [vmem:[#allocation6 + $0xa0] ss:$8 sps:$4 sm:$0xff]  }
 0x125   :  { %v297_v7 = vmul.f32 0.2, %v245_v58  ;;  %1082 = vmatmul.mubr.bf16.gmra.mrb[12].mxu1 %v349_v49  ;;  %1195 = vmatmul.mubr.bf16.gmra.mrb[44].mxu0 %v349_v49  ;;  %v327_v12 = vmax.f32 %v241_v47, %v295_v57  ;;  %v2925_v49 = vld [vmem:[#allocation6 + $0xa4] ss:$8 sps:$4 sm:$0xff]  }
 0x126   :  { %v298_v8 = vmul.f32 0.2, %v247_v6  ;;  %1900 = vmatpush1.bf16.msra.mxu1 %v2899_v50  ;;  %2013 = vmatpush1.bf16.msra.mxu0 %v3381_v54  ;;  %v328_v17 = vmax.f32 %v243_v51, %v296_v5  ;;  %v3408_v50 = vld [vmem:[#allocation6 + $0x1a4] ss:$8 sps:$4 sm:$0xff]  }
 0x127   :  { %v329_v14 = vmax.f32 %v245_v58, %v297_v7  ;;  %1901 = vmatprep.subr.bf16.mxu1 %v2907_v56  ;;  %2014 = vmatprep.subr.bf16.mxu0 %v3385_v1 }
 0x128   :  { %v330_v18 = vmax.f32 %v247_v6, %v298_v8  ;;  %v250_v19 = vpop.f32.mrb[20].mxu0  ;;  %v3413_v8 = vld [vmem:[#allocation6 + $0x1a0] ss:$8 sps:$4 sm:$0xff]  }
 0x129   :  { %v251_v21 = vadd.f32 %v250_v19, %v3323_v3  ;;  %v252_v22 = vpop.f32.mrb[21].mxu0  ;;  %v351_v23 = vpack.c.bf16 %v329_v14, %v327_v12 }
 0x12a   :  { %v253_v26 = vadd.f32 %v252_v22, %v3326_v4  ;;  %v254_v27 = vpop.f32.mrb[22].mxu0  ;;  %v352_v28 = vpack.c.bf16 %v330_v18, %v328_v17  ;;  %1902 = vmatpush1.bf16.msra.mxu1 %v2905_v10  ;;  %2015 = vmatpush1.bf16.msra.mxu0 %v3389_v11  ;;  %v2931_v10 = vld [vmem:[#allocation6 + $0xb4] ss:$8 sps:$4 sm:$0xff]  }
 0x12b   :  { %v299_v31 = vmul.f32 0.2, %v251_v21  ;;  %v255_v33 = vadd.f32 %v254_v27, %v3323_v3  ;;  %v256_v35 = vpop.f32.mrb[23].mxu0  ;;  %1903 = vmatprep.subr.bf16.mxu1 %v2913_v15  ;;  %2016 = vmatprep.subr.bf16.mxu0 %v3392_v16  ;;  %v3417_v17 = vld [vmem:[#allocation6 + $0x1b4] ss:$8 sps:$4 sm:$0xff]  }
 0x12c   :  { %v300_v38 = vmul.f32 0.2, %v253_v26  ;;  %v257_v39 = vadd.f32 %v256_v35, %v3326_v4  ;;  %1091 = vmatprep.mubr.bf16.mxu1 %v352_v28  ;;  %1204 = vmatprep.mubr.bf16.mxu0 %v352_v28  ;;  %v2937_v28 = vld [vmem:[#allocation6 + $0xc4] ss:$8 sps:$4 sm:$0xff]  }
 0x12d   :  { %v301_v41 = vmul.f32 0.2, %v255_v33  ;;  %1092 = vmatmul.mubr.bf16.gmra.mrb[16].mxu1 %v351_v23  ;;  %1205 = vmatmul.mubr.bf16.gmra.mrb[48].mxu0 %v351_v23  ;;  %v331_v47 = vmax.f32 %v251_v21, %v299_v31  ;;  %v2929_v23 = vld [vmem:[#allocation6 + $0xb0] ss:$8 sps:$4 sm:$0xff]  }
 0x12e   :  { %v302_v43 = vmul.f32 0.2, %v257_v39  ;;  %1904 = vmatpush1.bf16.msra.mxu1 %v2911_v24  ;;  %2017 = vmatpush1.bf16.msra.mxu0 %v3397_v20  ;;  %v332_v51 = vmax.f32 %v253_v26, %v300_v38  ;;  %v3421_v24 = vld [vmem:[#allocation6 + $0x1b0] ss:$8 sps:$4 sm:$0xff]  }
 0x12f   :  { %v333_v48 = vmax.f32 %v255_v33, %v301_v41  ;;  %1905 = vmatprep.subr.bf16.mxu1 %v2919_v32  ;;  %2018 = vmatprep.subr.bf16.mxu0 %v3401_v36  ;;  %v3424_v32 = vld [vmem:[#allocation6 + $0x1c4] ss:$8 sps:$4 sm:$0xff]  }
 0x130   :  { %v334_v52 = vmax.f32 %v257_v39, %v302_v43  ;;  %v260_v53 = vpop.f32.mrb[24].mxu0 }
 0x131   :  { %v261_v56 = vadd.f32 %v260_v53, %v3323_v3  ;;  %v262_v57 = vpop.f32.mrb[25].mxu0  ;;  %v353_v58 = vpack.c.bf16 %v333_v48, %v331_v47  ;;  %v2935_v48 = vld [vmem:[#allocation6 + $0xc0] ss:$8 sps:$4 sm:$0xff]  }
 0x132   :  { %v263_v5 = vadd.f32 %v262_v57, %v3326_v4  ;;  %v264_v6 = vpop.f32.mrb[26].mxu0  ;;  %v354_v7 = vpack.c.bf16 %v334_v52, %v332_v51  ;;  %1906 = vmatpush1.bf16.msra.mxu1 %v2917_v45  ;;  %2019 = vmatpush1.bf16.msra.mxu0 %v3405_v46 }
 0x133   :  { %v303_v12 = vmul.f32 0.2, %v261_v56  ;;  %v265_v14 = vadd.f32 %v264_v6, %v3323_v3  ;;  %v266_v15 = vpop.f32.mrb[27].mxu0  ;;  %1907 = vmatprep.subr.bf16.mxu1 %v2925_v49  ;;  %2020 = vmatprep.subr.bf16.mxu0 %v3408_v50  ;;  %v3429_v49 = vld [vmem:[#allocation6 + $0x1c0] ss:$8 sps:$4 sm:$0xff]  }
 0x134   :  { %v304_v18 = vmul.f32 0.2, %v263_v5  ;;  %v267_v19 = vadd.f32 %v266_v15, %v3326_v4  ;;  %1101 = vmatprep.mubr.bf16.mxu1 %v354_v7  ;;  %1214 = vmatprep.mubr.bf16.mxu0 %v354_v7  ;;  %v2941_v15 = vld [vmem:[#allocation6 + $0xd0] ss:$8 sps:$4 sm:$0xff]  }
 0x135   :  { %v305_v21 = vmul.f32 0.2, %v265_v14  ;;  %1102 = vmatmul.mubr.bf16.gmra.mrb[20].mxu1 %v353_v58  ;;  %1215 = vmatmul.mubr.bf16.gmra.mrb[52].mxu0 %v353_v58  ;;  %v335_v26 = vmax.f32 %v261_v56, %v303_v12 }
 0x136   :  { %v306_v22 = vmul.f32 0.2, %v267_v19  ;;  %1908 = vmatpush1.bf16.msra.mxu1 %v2923_v59  ;;  %2021 = vmatpush1.bf16.msra.mxu0 %v3413_v8  ;;  %v336_v31 = vmax.f32 %v263_v5, %v304_v18  ;;  %v3437_v18 = vld [vmem:[#allocation6 + $0x1d0] ss:$8 sps:$4 sm:$0xff]  }
 0x137   :  { %v337_v27 = vmax.f32 %v265_v14, %v305_v21  ;;  %1909 = vmatprep.subr.bf16.mxu1 %v2931_v10  ;;  %2022 = vmatprep.subr.bf16.mxu0 %v3417_v17  ;;  %v3435_v14 = vld [vmem:[#allocation6 + $0x1d4] ss:$8 sps:$4 sm:$0xff]   ;;  %v3441_v21 = vld [vmem:[#allocation6 + $0x1e4] ss:$8 sps:$4 sm:$0xff]  }
 0x138   :  { %v338_v33 = vmax.f32 %v267_v19, %v306_v22  ;;  %v270_v35 = vpop.f32.mrb[28].mxu0  ;;  %v2949_v19 = vld [vmem:[#allocation6 + $0xe4] ss:$8 sps:$4 sm:$0xff]   ;;  %3756 = vst [vmem:[#allocation15_spill] sm:$0xff] %v3441_v21  ;;  %v2947_v22 = vld [vmem:[#allocation6 + $0xe0] ss:$8 sps:$4 sm:$0xff]  }
 0x139   :  { %v271_v38 = vadd.f32 %v270_v35, %v3323_v3  ;;  %v272_v39 = vpop.f32.mrb[29].mxu0  ;;  %v355_v41 = vpack.c.bf16 %v337_v27, %v335_v26  ;;  %v2955_v26 = vld [vmem:[#allocation6 + $0xf4] ss:$8 sps:$4 sm:$0xff]   ;;  %v1245_v35 = vld [vmem:[%s3736_s6] sm:$0xf] }
 0x13a   :  { %v273_v43 = vadd.f32 %v272_v39, %v3326_v4  ;;  %v274_v45 = vpop.f32.mrb[30].mxu0  ;;  %v356_v47 = vpack.c.bf16 %v338_v33, %v336_v31  ;;  %1910 = vmatpush1.bf16.msra.mxu1 %v2929_v23  ;;  %2023 = vmatpush1.bf16.msra.mxu0 %v3421_v24  ;;  %v3443_v23 = vld [vmem:[#allocation6 + $0x1e0] ss:$8 sps:$4 sm:$0xff]   ;;  %v3447_v27 = vld [vmem:[#allocation6 + $0x1f4] ss:$8 sps:$4 sm:$0xff]   ;;  %v1257_v33 = vsub.s32 2, %v3311_v0  ;;  %v3460_v39 = vrot.slane %v1245_v35, %v3314_v63 }
 0x13b   :  { %v307_v51 = vmul.f32 0.2, %v271_v38  ;;  %v275_v52 = vadd.f32 %v274_v45, %v3323_v3  ;;  %v276_v53 = vpop.f32.mrb[31].mxu0  ;;  %1911 = vmatprep.subr.bf16.mxu1 %v2937_v28  ;;  %2024 = vmatprep.subr.bf16.mxu0 %v3424_v32  ;;  %3757 = vst [vmem:[#allocation16_spill] sm:$0xff] %v3443_v23  ;;  %3758 = vst [vmem:[#allocation17_spill] sm:$0xff] %v3447_v27 }
 0x13c   :  { %v308_v56 = vmul.f32 0.2, %v273_v43  ;;  %v277_v57 = vadd.f32 %v276_v53, %v3326_v4  ;;  %1111 = vmatprep.mubr.bf16.mxu1 %v356_v47  ;;  %1224 = vmatprep.mubr.bf16.mxu0 %v356_v47  ;;  %v2943_v4 = vld [vmem:[#allocation6 + $0xd4] ss:$8 sps:$4 sm:$0xff]   ;;  %v2953_v28 = vld [vmem:[#allocation6 + $0xf0] ss:$8 sps:$4 sm:$0xff]  }
 0x13d   :  { %v309_v58 = vmul.f32 0.2, %v275_v52  ;;  %1112 = vmatmul.mubr.bf16.gmra.mrb[24].mxu1 %v355_v41  ;;  %1225 = vmatmul.mubr.bf16.gmra.mrb[56].mxu0 %v355_v41  ;;  %v339_v5 = vmax.f32 %v271_v38, %v307_v51  ;;  %v3449_v31 = vld [vmem:[#allocation6 + $0x1f0] ss:$8 sps:$4 sm:$0xff]   ;;  %v1261_v38 = vsub.s32 3, %v3311_v0  ;;  %v3462_v41 = vrot.slane %v1245_v35, %v1257_v33 }
 0x13e   :  { %v310_v59 = vmul.f32 0.2, %v277_v57  ;;  %1912 = vmatpush1.bf16.msra.mxu1 %v2935_v48  ;;  %2025 = vmatpush1.bf16.msra.mxu0 %v3429_v49  ;;  %v340_v7 = vmax.f32 %v273_v43, %v308_v56  ;;  %3759 = vst [vmem:[#allocation18_spill] sm:$0xff] %v3449_v31  ;;  %v3465_v43 = vrot.slane %v1245_v35, %v3320_v2 }
 0x13f   :  { %v341_v6 = vmax.f32 %v275_v52, %v309_v58  ;;  %1913 = vmatprep.subr.bf16.mxu1 %v2943_v4  ;;  %2026 = vmatprep.subr.bf16.mxu0 %v3435_v14  ;;  %v3467_v45 = vrot.slane %v1245_v35, %v1261_v38 }
 0x140   :  { %v342_v3 = vmax.f32 %v277_v57, %v310_v59 }
 0x141   :  { %v357_v10 = vpack.c.bf16 %v341_v6, %v339_v5 }
 0x142   :  { %v358_v12 = vpack.c.bf16 %v342_v3, %v340_v7  ;;  %1914 = vmatpush1.bf16.msra.mxu1 %v2941_v15  ;;  %2027 = vmatpush1.bf16.msra.mxu0 %v3437_v18 }
 0x143   :  { %1915 = vmatprep.subr.bf16.mxu1 %v2949_v19  ;;  %2028 = vmatprep.subr.bf16.mxu0 %v3441_v21 }
 0x144   :  { %1121 = vmatprep.mubr.bf16.mxu1 %v358_v12  ;;  %1234 = vmatprep.mubr.bf16.mxu0 %v358_v12 }
 0x145   :  { %1122 = vmatmul.mubr.bf16.gmra.mrb[28].mxu1 %v357_v10  ;;  %1235 = vmatmul.mubr.bf16.gmra.mrb[60].mxu0 %v357_v10 }
 0x146   :  { %1916 = vmatpush1.bf16.msra.mxu1 %v2947_v22  ;;  %2029 = vmatpush1.bf16.msra.mxu0 %v3443_v23 }
 0x147   :  { %1917 = vmatprep.subr.bf16.mxu1 %v2955_v26  ;;  %2030 = vmatprep.subr.bf16.mxu0 %v3447_v27 }
 0x14a   :  { %1918 = vmatpush1.bf16.msra.mxu1 %v2953_v28  ;;  %2031 = vmatpush1.bf16.msra.mxu0 %v3449_v31 }
 0x14b   :  { %2592 = vmatprep.subr.bf16.mxu1 %v3307_v61 }
 0x1e0   :  { %v1053_v47 = vpop.f32.mrb[0].mxu1  ;;  %v1166_v61 = vpop.f32.mrb[32].mxu0 }
 0x1e1   :  { %v1267_v48 = vadd.f32 %v3460_v39, %v1053_v47  ;;  %v1269_v51 = vadd.f32 %v3462_v41, %v1166_v61  ;;  %v1055_v52 = vpop.f32.mrb[1].mxu1  ;;  %v1168_v53 = vpop.f32.mrb[33].mxu0 }
 0x1e2   :  { %v1268_v56 = vadd.f32 %v3465_v43, %v1055_v52  ;;  %v1270_v57 = vadd.f32 %v3467_v45, %v1168_v53  ;;  %v1057_v58 = vpop.f32.mrb[2].mxu1  ;;  %v1170_v59 = vpop.f32.mrb[34].mxu0 }
 0x1e3   :  { %v1331_v5 = vmul.f32 0.2, %v1267_v48  ;;  %v1333_v6 = vmul.f32 0.2, %v1269_v51  ;;  %v1271_v7 = vadd.f32 %v3460_v39, %v1057_v58  ;;  %v1273_v3 = vadd.f32 %v3462_v41, %v1170_v59  ;;  %v1059_v10 = vpop.f32.mrb[3].mxu1  ;;  %v1172_v12 = vpop.f32.mrb[35].mxu0 }
 0x1e4   :  { %v1332_v4 = vmul.f32 0.2, %v1268_v56  ;;  %v1334_v15 = vmul.f32 0.2, %v1270_v57  ;;  %v1272_v19 = vadd.f32 %v3465_v43, %v1059_v10  ;;  %v1274_v22 = vadd.f32 %v3467_v45, %v1172_v12 }
 0x1e5   :  { %v1335_v26 = vmul.f32 0.2, %v1271_v7  ;;  %v1337_v28 = vmul.f32 0.2, %v1273_v3  ;;  %v1395_v38 = vmax.f32 %v1267_v48, %v1331_v5  ;;  %v1397_v47 = vmax.f32 %v1269_v51, %v1333_v6 }
 0x1e6   :  { %v1336_v33 = vmul.f32 0.2, %v1272_v19  ;;  %v1338_v35 = vmul.f32 0.2, %v1274_v22  ;;  %v1396_v53 = vmax.f32 %v1268_v56, %v1332_v4  ;;  %v1398_v58 = vmax.f32 %v1270_v57, %v1334_v15 }
 0x1e7   :  { %v1399_v61 = vmax.f32 %v1271_v7, %v1335_v26  ;;  %v1401_v52 = vmax.f32 %v1273_v3, %v1337_v28 }
 0x1e8   :  { %v1400_v62 = vmax.f32 %v1272_v19, %v1336_v33  ;;  %v1402_v59 = vmax.f32 %v1274_v22, %v1338_v35  ;;  %v1063_v0 = vpop.f32.mrb[4].mxu1  ;;  %v1176_v2 = vpop.f32.mrb[36].mxu0 }
 0x1e9   :  { %v1459_v63 = vpack.c.bf16 %v1399_v61, %v1395_v38  ;;  %v1461_v31 = vpack.c.bf16 %v1401_v52, %v1397_v47  ;;  %v1275_v10 = vadd.f32 %v3460_v39, %v1063_v0  ;;  %v1277_v12 = vadd.f32 %v3462_v41, %v1176_v2  ;;  %v1065_v27 = vpop.f32.mrb[5].mxu1  ;;  %v1178_v23 = vpop.f32.mrb[37].mxu0 }
 0x1ea   :  { %v1276_v21 = vadd.f32 %v3465_v43, %v1065_v27  ;;  %v1278_v48 = vadd.f32 %v3467_v45, %v1178_v23  ;;  %v1067_v51 = vpop.f32.mrb[6].mxu1  ;;  %v1180_v5 = vpop.f32.mrb[38].mxu0  ;;  %v1460_v56 = vpack.c.bf16 %v1400_v62, %v1396_v53  ;;  %v1462_v57 = vpack.c.bf16 %v1402_v59, %v1398_v58 }
 0x1eb   :  { %v1339_v6 = vmul.f32 0.2, %v1275_v10  ;;  %v1341_v7 = vmul.f32 0.2, %v1277_v12  ;;  %v1279_v3 = vadd.f32 %v3460_v39, %v1067_v51  ;;  %v1281_v4 = vadd.f32 %v3462_v41, %v1180_v5  ;;  %v1069_v15 = vpop.f32.mrb[7].mxu1  ;;  %v1182_v0 = vpop.f32.mrb[39].mxu0 }
 0x1ec   :  { %v1340_v19 = vmul.f32 0.2, %v1276_v21  ;;  %v1342_v2 = vmul.f32 0.2, %v1278_v48  ;;  %v1280_v22 = vadd.f32 %v3465_v43, %v1069_v15  ;;  %v1282_v27 = vadd.f32 %v3467_v45, %v1182_v0  ;;  %1919 = vmatprep.mubr.bf16.mxu1 %v1460_v56  ;;  %2032 = vmatprep.mubr.bf16.mxu0 %v1462_v57 }
 0x1ed   :  { %v1343_v23 = vmul.f32 0.2, %v1279_v3  ;;  %v1345_v26 = vmul.f32 0.2, %v1281_v4  ;;  %1920 = vmatmul.mubr.bf16.vlgmr.msra.gmra.mrb[32].mxu1 %v1459_v63  ;;  %2033 = vmatmul.mubr.bf16.vlgmr.msra.gmra.mrb[64].mxu0 %v1461_v31  ;;  %v1403_v33 = vmax.f32 %v1275_v10, %v1339_v6  ;;  %v1405_v35 = vmax.f32 %v1277_v12, %v1341_v7 }
 0x1ee   :  { %v1344_v62 = vmul.f32 0.2, %v1280_v22  ;;  %v1346_v28 = vmul.f32 0.2, %v1282_v27  ;;  %2608 = vmatpush1.bf16.msra.mxu1 %v3334_v29  ;;  %v1404_v61 = vmax.f32 %v1276_v21, %v1340_v19  ;;  %v1406_v52 = vmax.f32 %v1278_v48, %v1342_v2 }
 0x1ef   :  { %v1407_v38 = vmax.f32 %v1279_v3, %v1343_v23  ;;  %v1409_v47 = vmax.f32 %v1281_v4, %v1345_v26  ;;  %2593 = vmatprep.subr.bf16.mxu1 %v3337_v34 }
 0x1f0   :  { %v1408_v53 = vmax.f32 %v1280_v22, %v1344_v62  ;;  %v1410_v58 = vmax.f32 %v1282_v27, %v1346_v28  ;;  %v1073_v59 = vpop.f32.mrb[8].mxu1  ;;  %v1186_v51 = vpop.f32.mrb[40].mxu0 }
 0x1f1   :  { %v1283_v5 = vadd.f32 %v3460_v39, %v1073_v59  ;;  %v1285_v63 = vadd.f32 %v3462_v41, %v1186_v51  ;;  %v1075_v31 = vpop.f32.mrb[9].mxu1  ;;  %v1188_v56 = vpop.f32.mrb[41].mxu0  ;;  %v1463_v57 = vpack.c.bf16 %v1407_v38, %v1403_v33  ;;  %v1465_v29 = vpack.c.bf16 %v1409_v47, %v1405_v35 }
 0x1f2   :  { %v1284_v10 = vadd.f32 %v3465_v43, %v1075_v31  ;;  %v1286_v12 = vadd.f32 %v3467_v45, %v1188_v56  ;;  %2609 = vmatpush1.bf16.msra.mxu1 %v3341_v40  ;;  %v1077_v34 = vpop.f32.mrb[10].mxu1  ;;  %v1190_v21 = vpop.f32.mrb[42].mxu0  ;;  %v1464_v48 = vpack.c.bf16 %v1408_v53, %v1404_v61  ;;  %v1466_v6 = vpack.c.bf16 %v1410_v58, %v1406_v52 }
 0x1f3   :  { %v1347_v7 = vmul.f32 0.2, %v1283_v5  ;;  %v1349_v3 = vmul.f32 0.2, %v1285_v63  ;;  %v1287_v4 = vadd.f32 %v3460_v39, %v1077_v34  ;;  %v1289_v15 = vadd.f32 %v3462_v41, %v1190_v21  ;;  %v1079_v0 = vpop.f32.mrb[11].mxu1  ;;  %v1192_v19 = vpop.f32.mrb[43].mxu0  ;;  %2594 = vmatprep.subr.bf16.mxu1 %v3344_v44 }
 0x1f4   :  { %v1348_v2 = vmul.f32 0.2, %v1284_v10  ;;  %v1350_v22 = vmul.f32 0.2, %v1286_v12  ;;  %v1288_v27 = vadd.f32 %v3465_v43, %v1079_v0  ;;  %v1290_v40 = vadd.f32 %v3467_v45, %v1192_v19  ;;  %1929 = vmatprep.mubr.bf16.mxu1 %v1464_v48  ;;  %2042 = vmatprep.mubr.bf16.mxu0 %v1466_v6 }
 0x1f5   :  { %v1351_v23 = vmul.f32 0.2, %v1287_v4  ;;  %v1353_v26 = vmul.f32 0.2, %v1289_v15  ;;  %1930 = vmatmul.mubr.bf16.gmra.mrb[36].mxu1 %v1463_v57  ;;  %2043 = vmatmul.mubr.bf16.gmra.mrb[68].mxu0 %v1465_v29  ;;  %v1411_v33 = vmax.f32 %v1283_v5, %v1347_v7  ;;  %v1413_v35 = vmax.f32 %v1285_v63, %v1349_v3 }
 0x1f6   :  { %v1352_v62 = vmul.f32 0.2, %v1288_v27  ;;  %v1354_v28 = vmul.f32 0.2, %v1290_v40  ;;  %2610 = vmatpush1.bf16.msra.mxu1 %v3349_v55  ;;  %v1412_v47 = vmax.f32 %v1284_v10, %v1348_v2  ;;  %v1414_v61 = vmax.f32 %v1286_v12, %v1350_v22 }
 0x1f7   :  { %v1415_v38 = vmax.f32 %v1287_v4, %v1351_v23  ;;  %v1417_v44 = vmax.f32 %v1289_v15, %v1353_v26  ;;  %2595 = vmatprep.subr.bf16.mxu1 %v3353_v60 }
 0x1f8   :  { %v1416_v52 = vmax.f32 %v1288_v27, %v1352_v62  ;;  %v1418_v53 = vmax.f32 %v1290_v40, %v1354_v28  ;;  %v1083_v58 = vpop.f32.mrb[12].mxu1  ;;  %v1196_v59 = vpop.f32.mrb[44].mxu0 }
 0x1f9   :  { %v1291_v51 = vadd.f32 %v3460_v39, %v1083_v58  ;;  %v1293_v31 = vadd.f32 %v3462_v41, %v1196_v59  ;;  %v1085_v56 = vpop.f32.mrb[13].mxu1  ;;  %v1198_v57 = vpop.f32.mrb[45].mxu0  ;;  %v1467_v29 = vpack.c.bf16 %v1415_v38, %v1411_v33  ;;  %v1469_v55 = vpack.c.bf16 %v1417_v44, %v1413_v35 }
 0x1fa   :  { %v1292_v5 = vadd.f32 %v3465_v43, %v1085_v56  ;;  %v1294_v63 = vadd.f32 %v3467_v45, %v1198_v57  ;;  %2611 = vmatpush1.bf16.msra.mxu1 %v3357_v9  ;;  %v1087_v60 = vpop.f32.mrb[14].mxu1  ;;  %v1200_v10 = vpop.f32.mrb[46].mxu0  ;;  %v1468_v12 = vpack.c.bf16 %v1416_v52, %v1412_v47  ;;  %v1470_v34 = vpack.c.bf16 %v1418_v53, %v1414_v61 }
 0x1fb   :  { %v1355_v21 = vmul.f32 0.2, %v1291_v51  ;;  %v1357_v48 = vmul.f32 0.2, %v1293_v31  ;;  %v1295_v6 = vadd.f32 %v3460_v39, %v1087_v60  ;;  %v1297_v7 = vadd.f32 %v3462_v41, %v1200_v10  ;;  %v1089_v3 = vpop.f32.mrb[15].mxu1  ;;  %v1202_v4 = vpop.f32.mrb[47].mxu0  ;;  %2596 = vmatprep.subr.bf16.mxu1 %v3360_v13 }
 0x1fc   :  { %v1356_v15 = vmul.f32 0.2, %v1292_v5  ;;  %v1358_v0 = vmul.f32 0.2, %v1294_v63  ;;  %v1296_v19 = vadd.f32 %v3465_v43, %v1089_v3  ;;  %v1298_v9 = vadd.f32 %v3467_v45, %v1202_v4  ;;  %1939 = vmatprep.mubr.bf16.mxu1 %v1468_v12  ;;  %2052 = vmatprep.mubr.bf16.mxu0 %v1470_v34 }
 0x1fd   :  { %v1359_v2 = vmul.f32 0.2, %v1295_v6  ;;  %v1361_v22 = vmul.f32 0.2, %v1297_v7  ;;  %1940 = vmatmul.mubr.bf16.gmra.mrb[40].mxu1 %v1467_v29  ;;  %2053 = vmatmul.mubr.bf16.gmra.mrb[72].mxu0 %v1469_v55  ;;  %v1419_v23 = vmax.f32 %v1291_v51, %v1355_v21  ;;  %v1421_v26 = vmax.f32 %v1293_v31, %v1357_v48 }
 0x1fe   :  { %v1360_v27 = vmul.f32 0.2, %v1296_v19  ;;  %v1362_v40 = vmul.f32 0.2, %v1298_v9  ;;  %2612 = vmatpush1.bf16.msra.mxu1 %v3365_v25  ;;  %v1420_v28 = vmax.f32 %v1292_v5, %v1356_v15  ;;  %v1422_v33 = vmax.f32 %v1294_v63, %v1358_v0 }
 0x1ff   :  { %v1423_v62 = vmax.f32 %v1295_v6, %v1359_v2  ;;  %v1425_v13 = vmax.f32 %v1297_v7, %v1361_v22  ;;  %2597 = vmatprep.subr.bf16.mxu1 %v3369_v30 }
 0x200   :  { %v1424_v35 = vmax.f32 %v1296_v19, %v1360_v27  ;;  %v1426_v38 = vmax.f32 %v1298_v9, %v1362_v40  ;;  %v1093_v44 = vpop.f32.mrb[16].mxu1  ;;  %v1206_v47 = vpop.f32.mrb[48].mxu0 }
 0x201   :  { %v1299_v61 = vadd.f32 %v3460_v39, %v1093_v44  ;;  %v1301_v52 = vadd.f32 %v3462_v41, %v1206_v47  ;;  %v1095_v53 = vpop.f32.mrb[17].mxu1  ;;  %v1208_v58 = vpop.f32.mrb[49].mxu0  ;;  %v1471_v59 = vpack.c.bf16 %v1423_v62, %v1419_v23  ;;  %v1473_v25 = vpack.c.bf16 %v1425_v13, %v1421_v26 }
 0x202   :  { %v1300_v51 = vadd.f32 %v3465_v43, %v1095_v53  ;;  %v1302_v31 = vadd.f32 %v3467_v45, %v1208_v58  ;;  %2613 = vmatpush1.bf16.msra.mxu1 %v3373_v37  ;;  %v1097_v30 = vpop.f32.mrb[18].mxu1  ;;  %v1210_v56 = vpop.f32.mrb[50].mxu0  ;;  %v1472_v57 = vpack.c.bf16 %v1424_v35, %v1420_v28  ;;  %v1474_v29 = vpack.c.bf16 %v1426_v38, %v1422_v33 }
 0x203   :  { %v1363_v55 = vmul.f32 0.2, %v1299_v61  ;;  %v1365_v5 = vmul.f32 0.2, %v1301_v52  ;;  %v1303_v63 = vadd.f32 %v3460_v39, %v1097_v30  ;;  %v1305_v60 = vadd.f32 %v3462_v41, %v1210_v56  ;;  %v1099_v10 = vpop.f32.mrb[19].mxu1  ;;  %v1212_v12 = vpop.f32.mrb[51].mxu0  ;;  %2598 = vmatprep.subr.bf16.mxu1 %v3376_v42 }
 0x204   :  { %v1364_v34 = vmul.f32 0.2, %v1300_v51  ;;  %v1366_v21 = vmul.f32 0.2, %v1302_v31  ;;  %v1304_v48 = vadd.f32 %v3465_v43, %v1099_v10  ;;  %v1306_v37 = vadd.f32 %v3467_v45, %v1212_v12  ;;  %1949 = vmatprep.mubr.bf16.mxu1 %v1472_v57  ;;  %2062 = vmatprep.mubr.bf16.mxu0 %v1474_v29 }
 0x205   :  { %v1367_v6 = vmul.f32 0.2, %v1303_v63  ;;  %v1369_v7 = vmul.f32 0.2, %v1305_v60  ;;  %1950 = vmatmul.mubr.bf16.gmra.mrb[44].mxu1 %v1471_v59  ;;  %2063 = vmatmul.mubr.bf16.gmra.mrb[76].mxu0 %v1473_v25  ;;  %v1427_v15 = vmax.f32 %v1299_v61, %v1363_v55  ;;  %v1429_v0 = vmax.f32 %v1301_v52, %v1365_v5 }
 0x206   :  { %v1368_v3 = vmul.f32 0.2, %v1304_v48  ;;  %v1370_v4 = vmul.f32 0.2, %v1306_v37  ;;  %2614 = vmatpush1.bf16.msra.mxu1 %v3381_v54  ;;  %v1428_v9 = vmax.f32 %v1300_v51, %v1364_v34  ;;  %v1430_v2 = vmax.f32 %v1302_v31, %v1366_v21 }
 0x207   :  { %v1431_v19 = vmax.f32 %v1303_v63, %v1367_v6  ;;  %v1433_v42 = vmax.f32 %v1305_v60, %v1369_v7  ;;  %2599 = vmatprep.subr.bf16.mxu1 %v3385_v1 }
 0x208   :  { %v1432_v22 = vmax.f32 %v1304_v48, %v1368_v3  ;;  %v1434_v27 = vmax.f32 %v1306_v37, %v1370_v4  ;;  %v1103_v40 = vpop.f32.mrb[20].mxu1  ;;  %v1216_v23 = vpop.f32.mrb[52].mxu0 }
 0x209   :  { %v3523_v26 = vpack.c.bf16 %v1433_v42, %v1429_v0  ;;  %v1307_v62 = vadd.f32 %v3460_v39, %v1103_v40  ;;  %v1309_v13 = vadd.f32 %v3462_v41, %v1216_v23  ;;  %v1105_v28 = vpop.f32.mrb[21].mxu1  ;;  %v1218_v54 = vpop.f32.mrb[53].mxu0  ;;  %v1475_v33 = vpack.c.bf16 %v1431_v19, %v1427_v15 }
 0x20a   :  { %v1308_v35 = vadd.f32 %v3465_v43, %v1105_v28  ;;  %v1310_v38 = vadd.f32 %v3467_v45, %v1218_v54  ;;  %2615 = vmatpush1.bf16.msra.mxu1 %v3389_v11  ;;  %v1107_v1 = vpop.f32.mrb[22].mxu1  ;;  %v1220_v44 = vpop.f32.mrb[54].mxu0  ;;  %v1476_v47 = vpack.c.bf16 %v1432_v22, %v1428_v9  ;;  %v3530_v61 = vpack.c.bf16 %v1434_v27, %v1430_v2 }
 0x20b   :  { %v1371_v52 = vmul.f32 0.2, %v1307_v62  ;;  %v1373_v53 = vmul.f32 0.2, %v1309_v13  ;;  %v1311_v58 = vadd.f32 %v3460_v39, %v1107_v1  ;;  %v1313_v59 = vadd.f32 %v3462_v41, %v1220_v44  ;;  %v1109_v25 = vpop.f32.mrb[23].mxu1  ;;  %v1222_v51 = vpop.f32.mrb[55].mxu0  ;;  %2600 = vmatprep.subr.bf16.mxu1 %v3392_v16 }
 0x20c   :  { %v1372_v31 = vmul.f32 0.2, %v1308_v35  ;;  %v1374_v30 = vmul.f32 0.2, %v1310_v38  ;;  %v1312_v56 = vadd.f32 %v3465_v43, %v1109_v25  ;;  %v1314_v11 = vadd.f32 %v3467_v45, %v1222_v51  ;;  %1959 = vmatprep.mubr.bf16.mxu1 %v1476_v47 }
 0x20d   :  { %v1375_v57 = vmul.f32 0.2, %v1311_v58  ;;  %v1377_v29 = vmul.f32 0.2, %v1313_v59  ;;  %1960 = vmatmul.mubr.bf16.gmra.mrb[48].mxu1 %v1475_v33  ;;  %v1435_v63 = vmax.f32 %v1307_v62, %v1371_v52  ;;  %v1437_v60 = vmax.f32 %v1309_v13, %v1373_v53 }
 0x20e   :  { %v1376_v55 = vmul.f32 0.2, %v1312_v56  ;;  %v1378_v5 = vmul.f32 0.2, %v1314_v11  ;;  %2616 = vmatpush1.bf16.msra.mxu1 %v3397_v20  ;;  %v1436_v16 = vmax.f32 %v1308_v35, %v1372_v31  ;;  %v1438_v34 = vmax.f32 %v1310_v38, %v1374_v30 }
 0x20f   :  { %v1439_v10 = vmax.f32 %v1311_v58, %v1375_v57  ;;  %v1441_v12 = vmax.f32 %v1313_v59, %v1377_v29  ;;  %2601 = vmatprep.subr.bf16.mxu1 %v3401_v36 }
 0x210   :  { %v1440_v21 = vmax.f32 %v1312_v56, %v1376_v55  ;;  %v1442_v48 = vmax.f32 %v1314_v11, %v1378_v5  ;;  %v1113_v37 = vpop.f32.mrb[24].mxu1  ;;  %v1226_v6 = vpop.f32.mrb[56].mxu0 }
 0x211   :  { %v1315_v7 = vadd.f32 %v3460_v39, %v1113_v37  ;;  %v1317_v3 = vadd.f32 %v3462_v41, %v1226_v6  ;;  %v1115_v4 = vpop.f32.mrb[25].mxu1  ;;  %v1228_v15 = vpop.f32.mrb[57].mxu0  ;;  %v1479_v0 = vpack.c.bf16 %v1439_v10, %v1435_v63  ;;  %v3541_v20 = vpack.c.bf16 %v1441_v12, %v1437_v60 }
 0x212   :  { %v1316_v19 = vadd.f32 %v3465_v43, %v1115_v4  ;;  %v1318_v42 = vadd.f32 %v3467_v45, %v1228_v15  ;;  %2617 = vmatpush1.bf16.msra.mxu1 %v3405_v46  ;;  %v1117_v36 = vpop.f32.mrb[26].mxu1  ;;  %v1230_v9 = vpop.f32.mrb[58].mxu0  ;;  %v1480_v2 = vpack.c.bf16 %v1440_v21, %v1436_v16  ;;  %v3546_v22 = vpack.c.bf16 %v1442_v48, %v1438_v34 }
 0x213   :  { %v1379_v27 = vmul.f32 0.2, %v1315_v7  ;;  %v1381_v40 = vmul.f32 0.2, %v1317_v3  ;;  %v1319_v23 = vadd.f32 %v3460_v39, %v1117_v36  ;;  %v1321_v62 = vadd.f32 %v3462_v41, %v1230_v9  ;;  %v1119_v13 = vpop.f32.mrb[27].mxu1  ;;  %v1232_v28 = vpop.f32.mrb[59].mxu0  ;;  %2602 = vmatprep.subr.bf16.mxu1 %v3408_v50 }
 0x214   :  { %v1380_v54 = vmul.f32 0.2, %v1316_v19  ;;  %v1382_v33 = vmul.f32 0.2, %v1318_v42  ;;  %v1320_v35 = vadd.f32 %v3465_v43, %v1119_v13  ;;  %v1322_v46 = vadd.f32 %v3467_v45, %v1232_v28  ;;  %1969 = vmatprep.mubr.bf16.mxu1 %v1480_v2  ;;  %v3760_v28 = vld [vmem:[#allocation15_spill] sm:$0xff] }
 0x215   :  { %v1383_v38 = vmul.f32 0.2, %v1319_v23  ;;  %v1385_v1 = vmul.f32 0.2, %v1321_v62  ;;  %1970 = vmatmul.mubr.bf16.gmra.mrb[52].mxu1 %v1479_v0  ;;  %v1443_v52 = vmax.f32 %v1315_v7, %v1379_v27  ;;  %v1445_v53 = vmax.f32 %v1317_v3, %v1381_v40 }
 0x216   :  { %v1384_v44 = vmul.f32 0.2, %v1320_v35  ;;  %v1386_v47 = vmul.f32 0.2, %v1322_v46  ;;  %2618 = vmatpush1.bf16.msra.mxu1 %v3413_v8  ;;  %v1444_v50 = vmax.f32 %v1316_v19, %v1380_v54  ;;  %v1446_v25 = vmax.f32 %v1318_v42, %v1382_v33  ;;  %v3762_v54 = vld [vmem:[#allocation17_spill] sm:$0xff] }
 0x217   :  { %v1447_v58 = vmax.f32 %v1319_v23, %v1383_v38  ;;  %v1449_v59 = vmax.f32 %v1321_v62, %v1385_v1  ;;  %2603 = vmatprep.subr.bf16.mxu1 %v3417_v17  ;;  %v3764_v33 = vld [vmem:[#allocation13_spill] sm:$0xff] }
 0x218   :  { %v1448_v51 = vmax.f32 %v1320_v35, %v1384_v44  ;;  %v1450_v31 = vmax.f32 %v1322_v46, %v1386_v47  ;;  %v1123_v30 = vpop.f32.mrb[28].mxu1  ;;  %v1236_v56 = vpop.f32.mrb[60].mxu0  ;;  %v3765_v35 = vld [vmem:[#allocation14_spill] sm:$0xff] }
 0x219   :  { %v1323_v11 = vadd.f32 %v3460_v39, %v1123_v30  ;;  %v1325_v57 = vadd.f32 %v3462_v41, %v1236_v56  ;;  %v1125_v29 = vpop.f32.mrb[29].mxu1  ;;  %v1238_v55 = vpop.f32.mrb[61].mxu0  ;;  %v1483_v5 = vpack.c.bf16 %v1447_v58, %v1443_v52  ;;  %v1485_v8 = vpack.c.bf16 %v1449_v59, %v1445_v53  ;;  %v2177_v53 = vld [vmem:[%s3739_s9] sm:$0x3] }
 0x21a   :  { %v1324_v63 = vadd.f32 %v3465_v43, %v1125_v29  ;;  %v1326_v60 = vadd.f32 %v3467_v45, %v1238_v55  ;;  %2619 = vmatpush1.bf16.msra.mxu1 %v3421_v24  ;;  %v1127_v17 = vpop.f32.mrb[30].mxu1  ;;  %v1240_v10 = vpop.f32.mrb[62].mxu0  ;;  %v1484_v12 = vpack.c.bf16 %v1448_v51, %v1444_v50  ;;  %v1486_v16 = vpack.c.bf16 %v1450_v31, %v1446_v25 }
 0x21b   :  { %v1387_v34 = vmul.f32 0.2, %v1323_v11  ;;  %v1389_v21 = vmul.f32 0.2, %v1325_v57  ;;  %v1327_v48 = vadd.f32 %v3460_v39, %v1127_v17  ;;  %v1329_v37 = vadd.f32 %v3462_v41, %v1240_v10  ;;  %v1129_v6 = vpop.f32.mrb[31].mxu1  ;;  %v1242_v7 = vpop.f32.mrb[63].mxu0  ;;  %2604 = vmatprep.subr.bf16.mxu1 %v3424_v32 }
 0x21c   :  { %v1388_v3 = vmul.f32 0.2, %v1324_v63  ;;  %v1390_v4 = vmul.f32 0.2, %v1326_v60  ;;  %v1328_v15 = vadd.f32 %v3465_v43, %v1129_v6  ;;  %v1330_v24 = vadd.f32 %v3467_v45, %v1242_v7  ;;  %1979 = vmatprep.mubr.bf16.mxu1 %v1484_v12 }
 0x21d   :  { %v1391_v0 = vmul.f32 0.2, %v1327_v48  ;;  %v1393_v19 = vmul.f32 0.2, %v1329_v37  ;;  %1980 = vmatmul.mubr.bf16.gmra.mrb[56].mxu1 %v1483_v5  ;;  %v1451_v39 = vmax.f32 %v1323_v11, %v1387_v34  ;;  %v1453_v41 = vmax.f32 %v1325_v57, %v1389_v21 }
 0x21e   :  { %v1392_v42 = vmul.f32 0.2, %v1328_v15  ;;  %v1394_v36 = vmul.f32 0.2, %v1330_v24  ;;  %2620 = vmatpush1.bf16.msra.mxu1 %v3429_v49  ;;  %v1452_v32 = vmax.f32 %v1324_v63, %v1388_v3  ;;  %v1454_v27 = vmax.f32 %v1326_v60, %v1390_v4  ;;  %v3761_v49 = vld [vmem:[#allocation16_spill] sm:$0xff] }
 0x21f   :  { %v1455_v9 = vmax.f32 %v1327_v48, %v1391_v0  ;;  %v1457_v2 = vmax.f32 %v1329_v37, %v1393_v19  ;;  %2605 = vmatprep.subr.bf16.mxu1 %v3435_v14  ;;  %v3763_v14 = vld [vmem:[#allocation18_spill] sm:$0xff]  ;;  %v3593_v11 = vrot.slane %v2177_v53, %v3764_v33  ;;  %v3596_v55 = vrot.slane %v2177_v53, %v3765_v35 }
 0x220   :  { %v1456_v40 = vmax.f32 %v1328_v15, %v1392_v42  ;;  %v1458_v43 = vmax.f32 %v1330_v24, %v1394_v36 }
 0x221   :  { %v1487_v23 = vpack.c.bf16 %v1455_v9, %v1451_v39  ;;  %v1489_v45 = vpack.c.bf16 %v1457_v2, %v1453_v41 }
 0x222   :  { %2621 = vmatpush1.bf16.msra.mxu1 %v3437_v18  ;;  %v1488_v62 = vpack.c.bf16 %v1456_v40, %v1452_v32  ;;  %v1490_v13 = vpack.c.bf16 %v1458_v43, %v1454_v27  ;;  %v1555_v18 = vld [vmem:[%s3738_s8] sm:$0x3] }
 0x223   :  { %2606 = vmatprep.subr.bf16.mxu1 %v3760_v28  ;;  %v3583_v46 = vrot.slane %v1555_v18, %v3765_v35 }
 0x224   :  { %1989 = vmatprep.mubr.bf16.mxu1 %v1488_v62 }
 0x225   :  { %1990 = vmatmul.mubr.bf16.gmra.mrb[60].mxu1 %v1487_v23 }
 0x226   :  { %2622 = vmatpush1.bf16.msra.mxu1 %v3761_v49  ;;  %2072 = vmatprep.mubr.bf16.mxu1 %v3530_v61  ;;  %v3580_v61 = vrot.slane %v1555_v18, %v3764_v33 }
 0x227   :  { %2607 = vmatprep.subr.bf16.mxu1 %v3762_v54 }
 0x22a   :  { %2623 = vmatpush1.bf16.msra.mxu1 %v3763_v14 }
 0x22d   :  { %2073 = vmatmul.mubr.bf16.vlgmr.msra.gmra.mrb[48].mxu1 %v3523_v26 }
 0x22e   :  { %2082 = vmatprep.mubr.bf16.mxu1 %v3546_v22 }
 0x235   :  { %2083 = vmatmul.mubr.bf16.gmra.mrb[52].mxu1 %v3541_v20 }
 0x236   :  { %2092 = vmatprep.mubr.bf16.mxu1 %v1486_v16 }
 0x23d   :  { %2093 = vmatmul.mubr.bf16.gmra.mrb[56].mxu1 %v1485_v8 }
 0x23e   :  { %2102 = vmatprep.mubr.bf16.mxu1 %v1490_v13 }
 0x245   :  { %2103 = vmatmul.mubr.bf16.gmra.mrb[60].mxu1 %v1489_v45 }
 0x2c0   :  { %v1921_v38 = vpop.f32.mrb[32].mxu1  ;;  %v2034_v26 = vpop.f32.mrb[64].mxu0 }
 0x2c1   :  { %v1922_v22 = vadd.f32 %v1921_v38, %v3580_v61  ;;  %v1923_v1 = vpop.f32.mrb[33].mxu1  ;;  %v2036_v20 = vpop.f32.mrb[65].mxu0 }
 0x2c2   :  { %v1924_v44 = vadd.f32 %v1923_v1, %v3583_v46  ;;  %v1925_v47 = vpop.f32.mrb[34].mxu1  ;;  %v2038_v52 = vpop.f32.mrb[66].mxu0 }
 0x2c3   :  { %v2035_v58 = vadd.f32 %v2034_v26, %v1922_v22  ;;  %v1926_v59 = vadd.f32 %v1925_v47, %v3580_v61  ;;  %v1927_v50 = vpop.f32.mrb[35].mxu1  ;;  %v2040_v25 = vpop.f32.mrb[67].mxu0 }
 0x2c4   :  { %v2037_v51 = vadd.f32 %v2036_v20, %v1924_v44  ;;  %v1928_v31 = vadd.f32 %v1927_v50, %v3583_v46 }
 0x2c5   :  { %v2113_v30 = vmul.f32 0.2, %v2035_v58  ;;  %v2039_v56 = vadd.f32 %v2038_v52, %v1926_v59 }
 0x2c6   :  { %v2114_v57 = vmul.f32 0.2, %v2037_v51  ;;  %v2041_v29 = vadd.f32 %v2040_v25, %v1928_v31 }
 0x2c7   :  { %v2145_v5 = vmax.f32 %v2035_v58, %v2113_v30  ;;  %v2115_v8 = vmul.f32 0.2, %v2039_v56 }
 0x2c8   :  { %v2146_v63 = vmax.f32 %v2037_v51, %v2114_v57  ;;  %v2116_v60 = vmul.f32 0.2, %v2041_v29  ;;  %v1931_v17 = vpop.f32.mrb[36].mxu1  ;;  %v2044_v10 = vpop.f32.mrb[68].mxu0 }
 0x2c9   :  { %v2147_v12 = vmax.f32 %v2039_v56, %v2115_v8  ;;  %v1932_v16 = vadd.f32 %v1931_v17, %v3580_v61  ;;  %v1933_v34 = vpop.f32.mrb[37].mxu1  ;;  %v2046_v21 = vpop.f32.mrb[69].mxu0  ;;  %v2189_v48 = vmul.f32 %v3593_v11, %v2145_v5 }
 0x2ca   :  { %v2148_v37 = vmax.f32 %v2041_v29, %v2116_v60  ;;  %v1934_v6 = vadd.f32 %v1933_v34, %v3583_v46  ;;  %v1935_v7 = vpop.f32.mrb[38].mxu1  ;;  %v2048_v3 = vpop.f32.mrb[70].mxu0  ;;  %v2190_v4 = vmul.f32 %v3596_v55, %v2146_v63 }
 0x2cb   :  { %v2045_v15 = vadd.f32 %v2044_v10, %v1932_v16  ;;  %v1936_v24 = vadd.f32 %v1935_v7, %v3580_v61  ;;  %v1937_v0 = vpop.f32.mrb[39].mxu1  ;;  %v2050_v19 = vpop.f32.mrb[71].mxu0  ;;  %v2191_v42 = vmul.f32 %v3593_v11, %v2147_v12 }
 0x2cc   :  { %v2047_v36 = vadd.f32 %v2046_v21, %v1934_v6  ;;  %v1938_v39 = vadd.f32 %v1937_v0, %v3583_v46  ;;  %v2221_v41 = vadd.f32 %v2190_v4, %v2189_v48  ;;  %v2192_v9 = vmul.f32 %v3596_v55, %v2148_v37 }
 0x2cd   :  { %v2117_v2 = vmul.f32 0.2, %v2045_v15  ;;  %v2049_v32 = vadd.f32 %v2048_v3, %v1936_v24 }
 0x2ce   :  { %v2118_v27 = vmul.f32 0.2, %v2047_v36  ;;  %v2051_v40 = vadd.f32 %v2050_v19, %v1938_v39  ;;  %2222 = vadd.xlane.f32.xlu0 %v2221_v41  ;;  %v2224_v43 = vadd.f32 %v2192_v9, %v2191_v42 }
 0x2cf   :  { %v2149_v23 = vmax.f32 %v2045_v15, %v2117_v2  ;;  %v2119_v45 = vmul.f32 0.2, %v2049_v32 }
 0x2d0   :  { %v2150_v62 = vmax.f32 %v2047_v36, %v2118_v27  ;;  %v2120_v13 = vmul.f32 0.2, %v2051_v40  ;;  %v1941_v28 = vpop.f32.mrb[40].mxu1  ;;  %v2054_v49 = vpop.f32.mrb[72].mxu0 }
 0x2d1   :  { %v2151_v54 = vmax.f32 %v2049_v32, %v2119_v45  ;;  %v1942_v14 = vadd.f32 %v1941_v28, %v3580_v61  ;;  %v1943_v18 = vpop.f32.mrb[41].mxu1  ;;  %v2056_v33 = vpop.f32.mrb[73].mxu0  ;;  %v2193_v35 = vmul.f32 %v3593_v11, %v2149_v23 }
 0x2d2   :  { %v2152_v38 = vmax.f32 %v2051_v40, %v2120_v13  ;;  %v1944_v26 = vadd.f32 %v1943_v18, %v3583_v46  ;;  %v1945_v22 = vpop.f32.mrb[42].mxu1  ;;  %v2058_v1 = vpop.f32.mrb[74].mxu0  ;;  %2225 = vadd.xlane.f32.xlu0 %v2224_v43  ;;  %v2194_v20 = vmul.f32 %v3596_v55, %v2150_v62 }
 0x2d3   :  { %v2055_v44 = vadd.f32 %v2054_v49, %v1942_v14  ;;  %v1946_v47 = vadd.f32 %v1945_v22, %v3580_v61  ;;  %v1947_v52 = vpop.f32.mrb[43].mxu1  ;;  %v2060_v53 = vpop.f32.mrb[75].mxu0  ;;  %v2195_v58 = vmul.f32 %v3593_v11, %v2151_v54 }
 0x2d4   :  { %v2057_v59 = vadd.f32 %v2056_v33, %v1944_v26  ;;  %v1948_v50 = vadd.f32 %v1947_v52, %v3583_v46  ;;  %v2227_v25 = vadd.f32 %v2194_v20, %v2193_v35  ;;  %v2196_v51 = vmul.f32 %v3596_v55, %v2152_v38 }
 0x2d5   :  { %v2121_v31 = vmul.f32 0.2, %v2055_v44  ;;  %v2059_v30 = vadd.f32 %v2058_v1, %v1946_v47 }
 0x2d6   :  { %v2122_v56 = vmul.f32 0.2, %v2057_v59  ;;  %v2061_v57 = vadd.f32 %v2060_v53, %v1948_v50  ;;  %2228 = vadd.xlane.f32.xlu1 %v2227_v25  ;;  %v2230_v29 = vadd.f32 %v2196_v51, %v2195_v58 }
 0x2d7   :  { %v2153_v5 = vmax.f32 %v2055_v44, %v2121_v31  ;;  %v2123_v8 = vmul.f32 0.2, %v2059_v30 }
 0x2d8   :  { %v2154_v63 = vmax.f32 %v2057_v59, %v2122_v56  ;;  %v2124_v60 = vmul.f32 0.2, %v2061_v57  ;;  %v1951_v17 = vpop.f32.mrb[44].mxu1  ;;  %v2064_v10 = vpop.f32.mrb[76].mxu0 }
 0x2d9   :  { %v2155_v12 = vmax.f32 %v2059_v30, %v2123_v8  ;;  %v1952_v16 = vadd.f32 %v1951_v17, %v3580_v61  ;;  %v1953_v34 = vpop.f32.mrb[45].mxu1  ;;  %v2066_v21 = vpop.f32.mrb[77].mxu0  ;;  %v2197_v48 = vmul.f32 %v3593_v11, %v2153_v5 }
 0x2da   :  { %v2156_v37 = vmax.f32 %v2061_v57, %v2124_v60  ;;  %v1954_v6 = vadd.f32 %v1953_v34, %v3583_v46  ;;  %v1955_v7 = vpop.f32.mrb[46].mxu1  ;;  %v2068_v3 = vpop.f32.mrb[78].mxu0  ;;  %2231 = vadd.xlane.f32.xlu1 %v2230_v29  ;;  %v2198_v4 = vmul.f32 %v3596_v55, %v2154_v63 }
 0x2db   :  { %v2065_v15 = vadd.f32 %v2064_v10, %v1952_v16  ;;  %v1956_v24 = vadd.f32 %v1955_v7, %v3580_v61  ;;  %v1957_v0 = vpop.f32.mrb[47].mxu1  ;;  %v2070_v19 = vpop.f32.mrb[79].mxu0  ;;  %v2199_v42 = vmul.f32 %v3593_v11, %v2155_v12 }
 0x2dc   :  { %v2067_v36 = vadd.f32 %v2066_v21, %v1954_v6  ;;  %v1958_v39 = vadd.f32 %v1957_v0, %v3583_v46  ;;  %v2233_v41 = vadd.f32 %v2198_v4, %v2197_v48  ;;  %v2200_v9 = vmul.f32 %v3596_v55, %v2156_v37 }
 0x2dd   :  { %v2125_v2 = vmul.f32 0.2, %v2065_v15  ;;  %v2069_v32 = vadd.f32 %v2068_v3, %v1956_v24 }
 0x2de   :  { %v2126_v27 = vmul.f32 0.2, %v2067_v36  ;;  %v2071_v40 = vadd.f32 %v2070_v19, %v1958_v39  ;;  %2234 = vadd.xlane.f32.xlu0 %v2233_v41  ;;  %v2236_v43 = vadd.f32 %v2200_v9, %v2199_v42 }
 0x2df   :  { %v2157_v23 = vmax.f32 %v2065_v15, %v2125_v2  ;;  %v2127_v45 = vmul.f32 0.2, %v2069_v32 }
 0x2e0   :  { %v2158_v62 = vmax.f32 %v2067_v36, %v2126_v27  ;;  %v2128_v13 = vmul.f32 0.2, %v2071_v40  ;;  %2237 = vadd.xlane.f32.xlu1 %v2236_v43 }
 0x2e1   :  { %v2159_v28 = vmax.f32 %v2069_v32, %v2127_v45  ;;  %v2201_v49 = vmul.f32 %v3593_v11, %v2157_v23 }
 0x2e2   :  { %v2160_v54 = vmax.f32 %v2071_v40, %v2128_v13  ;;  %v2202_v14 = vmul.f32 %v3596_v55, %v2158_v62 }
 0x2e3   :  { %v2203_v18 = vmul.f32 %v3593_v11, %v2159_v28 }
 0x2e4   :  { %v2239_v33 = vadd.f32 %v2202_v14, %v2201_v49  ;;  %v2204_v35 = vmul.f32 %v3596_v55, %v2160_v54 }
 0x2e6   :  { %2240 = vadd.xlane.f32.xlu0 %v2239_v33  ;;  %v2242_v38 = vadd.f32 %v2204_v35, %v2203_v18 }
 0x2e8   :  { %2243 = vadd.xlane.f32.xlu1 %v2242_v38 }
 0x300   :  { %v2074_v26 = vpop.f32.mrb[48].mxu1 }
 0x301   :  { %v2656_v22 = vadd.f32 %v2074_v26, %v3580_v61  ;;  %v2076_v1 = vpop.f32.mrb[49].mxu1 }
 0x302   :  { %v2657_v20 = vadd.f32 %v2076_v1, %v3583_v46  ;;  %v2078_v44 = vpop.f32.mrb[50].mxu1 }
 0x303   :  { %v2129_v47 = vmul.f32 0.2, %v2656_v22  ;;  %v2658_v52 = vadd.f32 %v2078_v44, %v3580_v61  ;;  %v2080_v53 = vpop.f32.mrb[51].mxu1 }
 0x304   :  { %v2130_v58 = vmul.f32 0.2, %v2657_v20  ;;  %v2659_v59 = vadd.f32 %v2080_v53, %v3583_v46 }
 0x305   :  { %v2161_v50 = vmax.f32 %v2656_v22, %v2129_v47  ;;  %v2131_v25 = vmul.f32 0.2, %v2658_v52 }
 0x306   :  { %v2162_v51 = vmax.f32 %v2657_v20, %v2130_v58  ;;  %v2132_v31 = vmul.f32 0.2, %v2659_v59 }
 0x307   :  { %v2163_v30 = vmax.f32 %v2658_v52, %v2131_v25  ;;  %v2205_v56 = vmul.f32 %v3593_v11, %v2161_v50 }
 0x308   :  { %v2164_v57 = vmax.f32 %v2659_v59, %v2132_v31  ;;  %v2084_v29 = vpop.f32.mrb[52].mxu1  ;;  %v2206_v5 = vmul.f32 %v3596_v55, %v2162_v51 }
 0x309   :  { %v2660_v8 = vadd.f32 %v2084_v29, %v3580_v61  ;;  %v2086_v63 = vpop.f32.mrb[53].mxu1  ;;  %v2207_v60 = vmul.f32 %v3593_v11, %v2163_v30 }
 0x30a   :  { %v2661_v17 = vadd.f32 %v2086_v63, %v3583_v46  ;;  %v2088_v10 = vpop.f32.mrb[54].mxu1  ;;  %v2245_v12 = vadd.f32 %v2206_v5, %v2205_v56  ;;  %v2208_v16 = vmul.f32 %v3596_v55, %v2164_v57 }
 0x30b   :  { %v2133_v34 = vmul.f32 0.2, %v2660_v8  ;;  %v2662_v21 = vadd.f32 %v2088_v10, %v3580_v61  ;;  %v2090_v48 = vpop.f32.mrb[55].mxu1 }
 0x30c   :  { %v2134_v37 = vmul.f32 0.2, %v2661_v17  ;;  %v2663_v6 = vadd.f32 %v2090_v48, %v3583_v46  ;;  %2246 = vadd.xlane.f32.xlu0 %v2245_v12  ;;  %v2248_v7 = vadd.f32 %v2208_v16, %v2207_v60  ;;  %v3766_v48 = vlaneseq }
 0x30d   :  { %v2165_v3 = vmax.f32 %v2660_v8, %v2133_v34  ;;  %v2135_v4 = vmul.f32 0.2, %v2662_v21 }
 0x30e   :  { %v2166_v15 = vmax.f32 %v2661_v17, %v2134_v37  ;;  %v2136_v24 = vmul.f32 0.2, %v2663_v6  ;;  %2249 = vadd.xlane.f32.xlu1 %v2248_v7  ;;  %v3659_v37 = vand.u32 127, %v3766_v48 }
 0x30f   :  { %v2167_v0 = vmax.f32 %v2662_v21, %v2135_v4  ;;  %v2209_v19 = vmul.f32 %v3593_v11, %v2165_v3 }
 0x310   :  { %v2168_v42 = vmax.f32 %v2663_v6, %v2136_v24  ;;  %v2094_v36 = vpop.f32.mrb[56].mxu1  ;;  %v2210_v39 = vmul.f32 %v3596_v55, %v2166_v15  ;;  %v2309_v6 = vadd.s32 4294967288, %v3659_v37  ;;  %v2316_v3 = vadd.s32 4294967280, %v3659_v37  ;;  %v3767_v24 = vld [vmem:[#allocation12_spill] sm:$0xff] }
 0x311   :  { %v2664_v41 = vadd.f32 %v2094_v36, %v3580_v61  ;;  %v2096_v9 = vpop.f32.mrb[57].mxu1  ;;  %v2211_v2 = vmul.f32 %v3593_v11, %v2167_v0  ;;  %v2323_v4 = vadd.s32 4294967272, %v3659_v37  ;;  %v2330_v15 = vadd.s32 4294967264, %v3659_v37 }
 0x312   :  { %v2665_v32 = vadd.f32 %v2096_v9, %v3583_v46  ;;  %v2098_v27 = vpop.f32.mrb[58].mxu1  ;;  %v2251_v40 = vadd.f32 %v2210_v39, %v2209_v19  ;;  %v2212_v43 = vmul.f32 %v3596_v55, %v2168_v42  ;;  %v2312_v0 = vsub.s32 %v2309_v6, %v3767_v24 }
 0x313   :  { %v2137_v23 = vmul.f32 0.2, %v2664_v41  ;;  %v2666_v45 = vadd.f32 %v2098_v27, %v3580_v61  ;;  %v2100_v62 = vpop.f32.mrb[59].mxu1  ;;  %v2307_v36 = vsub.s32 %v3659_v37, %v3767_v24  ;;  %v2319_v39 = vsub.s32 %v2316_v3, %v3767_v24 }
 0x314   :  { %v2138_v13 = vmul.f32 0.2, %v2665_v32  ;;  %v2667_v28 = vadd.f32 %v2100_v62, %v3583_v46  ;;  %2252 = vadd.xlane.f32.xlu0 %v2251_v40  ;;  %v2254_v49 = vadd.f32 %v2212_v43, %v2211_v2  ;;  %v2326_v2 = vsub.s32 %v2323_v4, %v3767_v24 }
 0x315   :  { %v2169_v54 = vmax.f32 %v2664_v41, %v2137_v23  ;;  %v2139_v14 = vmul.f32 0.2, %v2666_v45  ;;  %v2337_v27 = vadd.s32 4294967256, %v3659_v37  ;;  %v2333_v40 = vsub.s32 %v2330_v15, %v3767_v24 }
 0x316   :  { %v2170_v18 = vmax.f32 %v2665_v32, %v2138_v13  ;;  %v2140_v33 = vmul.f32 0.2, %v2667_v28  ;;  %2255 = vadd.xlane.f32.xlu1 %v2254_v49  ;;  %v2351_v49 = vadd.s32 4294967240, %v3659_v37  ;;  %v2393_v4 = vadd.s32 4294967192, %v3659_v37 }
 0x317   :  { %v2171_v35 = vmax.f32 %v2666_v45, %v2139_v14  ;;  %v2213_v38 = vmul.f32 %v3593_v11, %v2169_v54  ;;  %v2344_v45 = vadd.s32 4294967248, %v3659_v37 }
 0x318   :  { %v2172_v26 = vmax.f32 %v2667_v28, %v2140_v33  ;;  %v2104_v22 = vpop.f32.mrb[60].mxu1  ;;  %v2214_v1 = vmul.f32 %v3596_v55, %v2170_v18  ;;  %v2340_v18 = vsub.s32 %v2337_v27, %v3767_v24 }
 0x319   :  { %v2668_v20 = vadd.f32 %v2104_v22, %v3580_v61  ;;  %v2106_v44 = vpop.f32.mrb[61].mxu1  ;;  %v2215_v47 = vmul.f32 %v3593_v11, %v2171_v35 }
 0x31a   :  { %v2669_v52 = vadd.f32 %v2106_v44, %v3583_v46  ;;  %v2108_v53 = vpop.f32.mrb[62].mxu1  ;;  %v2257_v58 = vadd.f32 %v2214_v1, %v2213_v38  ;;  %v2216_v59 = vmul.f32 %v3596_v55, %v2172_v26  ;;  %v2347_v38 = vsub.s32 %v2344_v45, %v3767_v24 }
 0x31b   :  { %v2141_v50 = vmul.f32 0.2, %v2668_v20  ;;  %v2670_v25 = vadd.f32 %v2108_v53, %v3580_v61  ;;  %v2110_v51 = vpop.f32.mrb[63].mxu1  ;;  %v2358_v1 = vadd.s32 4294967232, %v3659_v37  ;;  %v2365_v53 = vadd.s32 4294967224, %v3659_v37 }
 0x31c   :  { %v2142_v31 = vmul.f32 0.2, %v2669_v52  ;;  %v2671_v30 = vadd.f32 %v2110_v51, %v3583_v46  ;;  %2258 = vadd.xlane.f32.xlu0 %v2257_v58  ;;  %v2260_v56 = vadd.f32 %v2216_v59, %v2215_v47 }
 0x31d   :  { %v2173_v57 = vmax.f32 %v2668_v20, %v2141_v50  ;;  %v2143_v29 = vmul.f32 0.2, %v2670_v25 }
 0x31e   :  { %v2174_v5 = vmax.f32 %v2669_v52, %v2142_v31  ;;  %v2144_v8 = vmul.f32 0.2, %v2671_v30  ;;  %2261 = vadd.xlane.f32.xlu1 %v2260_v56  ;;  %v2354_v52 = vsub.s32 %v2351_v49, %v3767_v24 }
 0x31f   :  { %v2175_v63 = vmax.f32 %v2670_v25, %v2143_v29  ;;  %v2217_v60 = vmul.f32 %v3593_v11, %v2173_v57  ;;  %v2372_v25 = vadd.s32 4294967216, %v3659_v37 }
 0x320   :  { %v2176_v17 = vmax.f32 %v2671_v30, %v2144_v8  ;;  %v2218_v10 = vmul.f32 %v3596_v55, %v2174_v5  ;;  %v2361_v30 = vsub.s32 %v2358_v1, %v3767_v24  ;;  %v2368_v5 = vsub.s32 %v2365_v53, %v3767_v24 }
 0x321   :  { %v2219_v12 = vmul.f32 %v3593_v11, %v2175_v63  ;;  %v3667_v11 = vstv %s3740_s10  ;;  %v2379_v8 = vadd.s32 4294967208, %v3659_v37  ;;  %s3038_s10 = smov [#allocation8]  }
 0x322   :  { %v2263_v61 = vadd.f32 %v2218_v10, %v2217_v60  ;;  %v2220_v16 = vmul.f32 %v3596_v55, %v2176_v17  ;;  %v2375_v10 = vsub.s32 %v2372_v25, %v3767_v24  ;;  %s2422_s12 = sshll.u32 %s3038_s10, 4  ;;  %s2423_s12 = int_to_ptr.vmem [resolvable:$true] %s2422_s12 }
 0x323   :  { %s3003_s13 = scalar_lea.vmem %s2423_s12, 16  ;;  %s3007_s14 = scalar_lea.vmem %s2423_s12, 32 }
 0x324   :  { %2264 = vadd.xlane.f32.xlu0 %v2263_v61  ;;  %v2266_v46 = vadd.f32 %v2220_v16, %v2219_v12  ;;  %p3004_p2 = scmp.ne.s32.totalorder %s2423_s12, %s3003_s13  ;;  %p3008_p3 = scmp.lt.s32.totalorder %s2423_s12, %s2423_s12 }
 0x325   :  { %p3009_p4 = scmp.lt.s32.totalorder %s3007_s14, %s3003_s13 }
 0x326   :  { %2267 = vadd.xlane.f32.xlu1 %v2266_v46 }
 0x327   :  { %p3010_p5 = por %p3009_p4, %p3008_p3 }
 0x329   :  { %p3011_p6 = pnand %p3010_p5, %p3004_p2 }
 0x35b   :  { %v2223_v34 = vpop.xlane.xlu0 %2222 }
 0x35c   :  { %v2271_v9 = vadd.f32 %v3667_v11, %v2223_v34  ;;  %v2386_v34 = vadd.s32 4294967200, %v3659_v37 }
 0x35e   :  { %v2308_v54 = vrot.slane %v2271_v9, %v2307_v36  ;;  %v2400_v36 = vadd.s32 4294967184, %v3659_v37  ;;  %v2396_v9 = vsub.s32 %v2393_v4, %v3767_v24 }
 0x35f   :  { %v2226_v7 = vpop.xlane.xlu0 %2225 }
 0x360   :  { %v2272_v19 = vadd.f32 %v3667_v11, %v2226_v7 }
 0x362   :  { %v2313_v62 = vrot.slane %v2272_v19, %v2312_v0  ;;  %v2389_v0 = vsub.s32 %v2386_v34, %v3767_v24 }
 0x363   :  { %v2229_v21 = vpop.xlane.xlu1 %2228 }
 0x364   :  { %v2273_v41 = vadd.f32 %v3667_v11, %v2229_v21  ;;  %v2315_v20 = vsel %vm2314_vm3, %v2313_v62, %v2308_v54  ;;  %v2382_v21 = vsub.s32 %v2379_v8, %v3767_v24 }
 0x366   :  { %v2320_v28 = vrot.slane %v2273_v41, %v2319_v39 }
 0x367   :  { %v2232_v55 = vpop.xlane.xlu1 %2231 }
 0x368   :  { %v2274_v32 = vadd.f32 %v3667_v11, %v2232_v55  ;;  %v2322_v47 = vsel %vm2321_vm4, %v2320_v28, %v2315_v20 }
 0x36a   :  { %v2327_v14 = vrot.slane %v2274_v32, %v2326_v2 }
 0x36b   :  { %v2235_v42 = vpop.xlane.xlu0 %2234 }
 0x36c   :  { %v2275_v43 = vadd.f32 %v3667_v11, %v2235_v42  ;;  %v2329_v58 = vsel %vm2328_vm5, %v2327_v14, %v2322_v47 }
 0x36d   :  { %v2238_v23 = vpop.xlane.xlu1 %2237 }
 0x36e   :  { %v2276_v33 = vadd.f32 %v3667_v11, %v2238_v23  ;;  %v2334_v35 = vrot.slane %v2275_v43, %v2333_v40  ;;  %v2407_v40 = vadd.s32 4294967176, %v3659_v37  ;;  %v2403_v43 = vsub.s32 %v2400_v36, %v3767_v24 }
 0x370   :  { %v2341_v59 = vrot.slane %v2276_v33, %v2340_v18  ;;  %v2336_v51 = vsel %vm2335_vm6, %v2334_v35, %v2329_v58  ;;  %v2410_v49 = vsub.s32 %v2407_v40, %v3767_v24 }
 0x372   :  { %v2343_v63 = vsel %vm2342_vm7, %v2341_v59, %v2336_v51 }
 0x373   :  { %v2241_v13 = vpop.xlane.xlu0 %2240 }
 0x374   :  { %v2277_v26 = vadd.f32 %v3667_v11, %v2241_v13 }
 0x375   :  { %v2244_v22 = vpop.xlane.xlu1 %2243 }
 0x376   :  { %v2278_v50 = vadd.f32 %v3667_v11, %v2244_v22  ;;  %v2348_v31 = vrot.slane %v2277_v26, %v2347_v38 }
 0x378   :  { %v2355_v60 = vrot.slane %v2278_v50, %v2354_v52  ;;  %v2350_v12 = vsel %vm2349_vm8, %v2348_v31, %v2343_v63 }
 0x37a   :  { %v2357_v48 = vsel %vm2356_vm9, %v2355_v60, %v2350_v12 }
 0x399   :  { %v2247_v44 = vpop.xlane.xlu0 %2246 }
 0x39a   :  { %v2279_v56 = vadd.f32 %v3667_v11, %v2247_v44 }
 0x39b   :  { %v2250_v57 = vpop.xlane.xlu1 %2249 }
 0x39c   :  { %v2280_v17 = vadd.f32 %v3667_v11, %v2250_v57  ;;  %v2362_v61 = vrot.slane %v2279_v56, %v2361_v30 }
 0x39e   :  { %v2369_v6 = vrot.slane %v2280_v17, %v2368_v5  ;;  %v2364_v55 = vsel %vm2363_vm10, %v2362_v61, %v2357_v48 }
 0x3a0   :  { %v2371_v39 = vsel %vm2370_vm11, %v2369_v6, %v2364_v55 }
 0x3a1   :  { %v2253_v29 = vpop.xlane.xlu0 %2252 }
 0x3a2   :  { %v2281_v16 = vadd.f32 %v3667_v11, %v2253_v29 }
 0x3a3   :  { %v2256_v46 = vpop.xlane.xlu1 %2255 }
 0x3a4   :  { %v2282_v7 = vadd.f32 %v3667_v11, %v2256_v46  ;;  %v2376_v15 = vrot.slane %v2281_v16, %v2375_v10 }
 0x3a6   :  { %v2383_v41 = vrot.slane %v2282_v7, %v2382_v21  ;;  %v2378_v32 = vsel %vm2377_vm12, %v2376_v15, %v2371_v39 }
 0x3a8   :  { %v2385_v23 = vsel %vm2384_vm13, %v2383_v41, %v2378_v32 }
 0x3a9   :  { %v2259_v3 = vpop.xlane.xlu0 %2258 }
 0x3aa   :  { %v2283_v19 = vadd.f32 %v3667_v11, %v2259_v3 }
 0x3ab   :  { %v2262_v42 = vpop.xlane.xlu1 %2261 }
 0x3ac   :  { %v2284_v2 = vadd.f32 %v3667_v11, %v2262_v42  ;;  %v2390_v27 = vrot.slane %v2283_v19, %v2389_v0 }
 0x3ae   :  { %v2397_v45 = vrot.slane %v2284_v2, %v2396_v9  ;;  %v2392_v13 = vsel %vm2391_vm14, %v2390_v27, %v2385_v23 }
 0x3b0   :  { %v2399_v37 = vsel %vm2398_vm15, %v2397_v45, %v2392_v13 }
 0x3b1   :  { %v2265_v62 = vpop.xlane.xlu0 %2264 }
 0x3b2   :  { %v2285_v28 = vadd.f32 %v3667_v11, %v2265_v62 }
 0x3b3   :  { %v2268_v54 = vpop.xlane.xlu1 %2267 }
 0x3b4   :  { %v2404_v14 = vrot.slane %v2285_v28, %v2403_v43  ;;  %v2286_v18 = vadd.f32 %v3667_v11, %v2268_v54 }
 0x3b6   :  { %v2411_v33 = vrot.slane %v2286_v18, %v2410_v49  ;;  %v2406_v35 = vsel %vm2405_vm0, %v2404_v14, %v2399_v37 }
 0x3b8   :  { %v2413_v38 = vsel %vm2412_vm1, %v2411_v33, %v2406_v35 }
 0x3b9   :  { %2415 = vst [vmem:[#allocation8] sm:$0x1] %v2413_v38 }
 0x3ba   :  { %3014 = shalt.err (!%p3011_p6)
}
 0x3bb   :  { %s3015_s16 = scalar_lea.hbm %s3741_s11, 16 }
 0x3bc   :  { %p3016_p7 = scmp.ne.s32.totalorder %s3741_s11, %s3015_s16  ;;  %p3019_p8 = scmp.lt.u32.totalorder %s3015_s16, %s3741_s11 }
 0x3be   :  { %p3021_p9 = pnand %p3019_p8, %p3016_p7 }
 0x3c0   :  { %3024 = shalt.err (!%p3021_p9)
}
 0x3c1   :  { %2425 = dma.vmem_to_hbm [thread:$0]  %s2423_s12, 16, %s3741_s11, [#allocation5]  }
 0x3c2   :  { %3029 = dma.done.wait [#allocation5], 16  }
 0x3c3   :  { %3030 = vsyncadd [#allocation5], 4294967280 }
 0x3c4   :  { %2429 = vsyncpa [#allocation4], 1 }
 0x3c5   :  { %2430 = vsyncpa [#allocation7], 1 }
 0x3c6   :  { %2431 = vsyncpa [#allocation5], 1 }

</bundles_post_ra>
